<compile_context>
chip_gen: v7x
topology: tpu7x:2x2x1
jax: 0.10.0
libtpu: 0.0.40
codegen_flags: <defaults>
</compile_context>

<pallas_src>
import functools

import jax
import jax.numpy as jnp
from jax.experimental import pallas as pl
from jax.experimental.pallas import tpu as pltpu


_MIB = 1024 * 1024

# Lazily discovered: does this JAX build accept pl.Buffered(1) for single-
# buffered loop-invariant inputs?  (None = unknown, True/False once probed.)
_SINGLE_BUFFER_OK = None


# ---------------------------------------------------------------------------
# Hardware / VMEM-budget helpers
# ---------------------------------------------------------------------------
def _vmem_capacity_bytes():
    try:
        return int(pltpu.get_tpu_info().vmem_capacity_bytes)
    except Exception:
        return 64 * _MIB          # conservative fallback (v7x physical VMEM)


def _round_up(x, m):
    return ((x + m - 1) // m) * m


def _estimate_vmem_bytes(tc, bblk, in_feat, hidden, cdt_bytes, single_buffer):
    """Rough per-call VMEM footprint for a given time chunk."""
    h4 = 4 * hidden
    nbuf_inv = 1 if single_buffer else 2
    b = 0
    b += 2 * tc * bblk * in_feat * cdt_bytes        # x block (double buffered)
    b += 2 * tc * bblk * hidden * cdt_bytes         # out block (double buffered)
    b += tc * bblk * h4 * 4                         # fused-projection gx (f32 temp)
    b += 3 * bblk * h4 * 4                          # per-step gate temporaries
    b += nbuf_inv * (in_feat + hidden) * h4 * cdt_bytes   # W_ih^T + W_hh^T
    b += nbuf_inv * h4 * 4                          # bias
    b += 8 * bblk * hidden * 4                      # h0/c0 + hN/cN buffers
    return b


def _choose_chunk(T, bblk, in_feat, hidden, cdt_bytes, vmem_budget, max_chunk):
    """Pick (time_chunk, padded_T) so the working set fits the VMEM budget."""
    def fits(tc):
        return _estimate_vmem_bytes(tc, bblk, in_feat, hidden, cdt_bytes,
                                    True) <= vmem_budget

    tc_max = 1
    for tc in range(2, max(max_chunk, 1) + 1):
        if fits(tc):
            tc_max = tc
        else:
            break
    if T <= tc_max:
        return T, T
    best_div = max(d for d in range(1, tc_max + 1) if T % d == 0)
    if 2 * best_div >= tc_max:
        return best_div, T                     # good divisor: no time padding
    return tc_max, _round_up(T, tc_max)        # pad T; tail steps masked


# ---------------------------------------------------------------------------
# Pallas kernel: fused input projection + serial LSTM recurrence per time chunk
# ---------------------------------------------------------------------------
def _lstm_layer_kernel(x_ref, wih_ref, whh_ref, b_ref, h0_ref, c0_ref,
                       out_ref, hN_ref, cN_ref,
                       *, hidden, chunk, tail_valid):
    """Grid = (batch_blocks, time_chunks); time is the sequential axis.

    The recurrent state is carried in the constant-index hN/cN output blocks
    (resident in VMEM across the time axis).  Per grid step:
        gx    = x_chunk @ W_ih^T + b          # one wide MXU matmul per chunk
        per t: gates = gx[t] + h @ W_hh^T     # MXU
               s = sigmoid(gates)             # gate order (i,f,o,g); g cols ×2
               g = 2*s[...,3H:] - 1           # == tanh of unscaled preact
               c <- f*c + i*g ; h <- o*tanh(c)
    """
    H = hidden
    t = pl.program_id(1)

    @pl.when(t == 0)
    def _():
        hN_ref[...] = h0_ref[...]
        cN_ref[...] = c0_ref[...]

    tc, bb, in_feat = x_ref.shape
    # Fused input projection for the whole chunk (never materialized in HBM).
    gx = jnp.dot(x_ref[...].reshape(tc * bb, in_feat), wih_ref[...],
                 preferred_element_type=jnp.float32)
    gx = (gx + b_ref[...]).reshape(tc, bb, 4 * H)

    whh = whh_ref[...]                      # (H, 4H), loop-invariant
    h = hN_ref[...]                         # (Bblk, H) f32 state
    c = cN_ref[...]
    not_last_chunk = t != pl.num_programs(1) - 1

    for i in range(chunk):                  # static unroll over the chunk
        gates = gx[i] + jnp.dot(h.astype(whh.dtype), whh,
                                preferred_element_type=jnp.float32)
        s = jax.nn.sigmoid(gates)           # single 4H-wide EUP activation
        i_g = s[:, 0 * H:1 * H]
        f_g = s[:, 1 * H:2 * H]
        o_g = s[:, 2 * H:3 * H]
        g_g = 2.0 * s[:, 3 * H:] - 1.0      # tanh via pre-scaled sigmoid
        c_new = f_g * c + i_g * g_g
        h_new = o_g * jnp.tanh(c_new)
        if i < tail_valid:                  # always a real timestep
            h, c = h_new, c_new
        else:                               # padded timestep iff last chunk
            h = jnp.where(not_last_chunk, h_new, h)
            c = jnp.where(not_last_chunk, c_new, c)
        out_ref[i] = h_new.astype(out_ref.dtype)

    hN_ref[...] = h
    cN_ref[...] = c


def _run_lstm_layer(x, wih_t, whh_t, bias2d, h0, c0, *, hidden, bblk, chunk,
                    tail_valid, vmem_limit, out_dtype):
    """x: (Tp, Bp, I) padded input (compute dtype).  Returns
    (out_seq (Tp, Bp, H), hN (Bp, H) f32, cN (Bp, H) f32)."""
    Tp, Bp, in_feat = x.shape
    H = hidden
    n_b = Bp // bblk
    n_t = Tp // chunk

    kernel = functools.partial(_lstm_layer_kernel, hidden=H, chunk=chunk,
                               tail_valid=tail_valid)

    def build_call(single_buffer):
        def spec(shape, index_map, invariant):
            if single_buffer and invariant:
                return pl.BlockSpec(shape, index_map,
                                    pipeline_mode=pl.Buffered(1))
            return pl.BlockSpec(shape, index_map)

        state_invariant = (n_b == 1)
        in_specs = [
            pl.BlockSpec((chunk, bblk, in_feat), lambda b, t: (t, b, 0)),  # x
            spec((in_feat, 4 * H), lambda b, t: (0, 0), True),             # W_ih^T
            spec((H, 4 * H), lambda b, t: (0, 0), True),                   # W_hh^T
            spec((1, 4 * H), lambda b, t: (0, 0), True),                   # bias
            spec((bblk, H), lambda b, t: (b, 0), state_invariant),         # h0
            spec((bblk, H), lambda b, t: (b, 0), state_invariant),         # c0
        ]
        out_specs = [
            pl.BlockSpec((chunk, bblk, H), lambda b, t: (t, b, 0)),        # out
            pl.BlockSpec((bblk, H), lambda b, t: (b, 0)),                  # h_N
            pl.BlockSpec((bblk, H), lambda b, t: (b, 0)),                  # c_N
        ]
        return pl.pallas_call(
            kernel,
            out_shape=(
                jax.ShapeDtypeStruct((Tp, Bp, H), out_dtype),
                jax.ShapeDtypeStruct((Bp, H), jnp.float32),
                jax.ShapeDtypeStruct((Bp, H), jnp.float32),
            ),
            grid_spec=pltpu.PrefetchScalarGridSpec(
                num_scalar_prefetch=0,
                grid=(n_b, n_t),
                in_specs=in_specs,
                out_specs=out_specs,
            ),
            compiler_params=pltpu.CompilerParams(
                dimension_semantics=("parallel", "arbitrary"),
                vmem_limit_bytes=vmem_limit),
        )

    global _SINGLE_BUFFER_OK
    attempts = ([True, False] if _SINGLE_BUFFER_OK is None
                else [_SINGLE_BUFFER_OK])
    last_err = None
    for sb in attempts:
        try:
            out_seq, hN, cN = build_call(sb)(x, wih_t, whh_t, bias2d, h0, c0)
            _SINGLE_BUFFER_OK = sb
            return out_seq, hN, cN
        except Exception as e:     # fall back to default double-buffering
            last_err = e
            if sb and len(attempts) > 1:
                continue
            raise
    raise last_err


# ---------------------------------------------------------------------------
# Weight preparation
# ---------------------------------------------------------------------------
def _permute_and_scale_gates(w, H):
    """PyTorch gate order (i, f, g, o) -> (i, f, o, 2*g) along axis 0.
    The ×2 on the g block lets the kernel use one 4H-wide sigmoid:
    tanh(z) = 2*sigmoid(2z) - 1."""
    return jnp.concatenate([w[:2 * H], w[3 * H:4 * H], 2.0 * w[2 * H:3 * H]],
                           axis=0)


class PallasLSTM:
    """Mirrors horizon qat LSTM forward (unidirectional, proj_size=0, dropout=0)."""

    def __init__(self, input_size, hidden_size, num_layers, bias=True,
                 batch_first=False, dropout=0.0, bidirectional=False,
                 proj_size=0, compute_dtype=jnp.float32, max_chunk=32, seed=0):
        assert bias, "only bias=True implemented"
        assert not bidirectional, "bidirectional not implemented"
        assert proj_size == 0, "proj_size > 0 not implemented"
        assert dropout == 0.0, "dropout not implemented"
        self.input_size = input_size
        self.hidden_size = hidden_size
        self.num_layers = num_layers
        self.batch_first = batch_first
        self.compute_dtype = compute_dtype
        self.max_chunk = max(int(max_chunk), 1)

        key = jax.random.PRNGKey(seed)
        k = 1.0 / jnp.sqrt(hidden_size)
        H = hidden_size
        self.params = []          # original PyTorch layout (gate order i, f, g, o)
        self.kernel_params = []   # permuted (i,f,o,2g), transposed, bias pre-summed
        for layer_i in range(num_layers):
            in_feat = input_size if layer_i == 0 else hidden_size
            key, k1, k2, k3, k4 = jax.random.split(key, 5)
            w_ih = jax.random.uniform(k1, (4 * H, in_feat), jnp.float32, -k, k)
            w_hh = jax.random.uniform(k2, (4 * H, H), jnp.float32, -k, k)
            b_ih = jax.random.uniform(k3, (4 * H,), jnp.float32, -k, k)
            b_hh = jax.random.uniform(k4, (4 * H,), jnp.float32, -k, k)
            self.params.append((w_ih, w_hh, b_ih, b_hh))

            wih_t = _permute_and_scale_gates(w_ih, H).T.astype(compute_dtype)
            whh_t = _permute_and_scale_gates(w_hh, H).T.astype(compute_dtype)
            bias2d = _permute_and_scale_gates(b_ih + b_hh, H)[None, :]   # f32
            self.kernel_params.append((wih_t, whh_t, bias2d))

    def __call__(self, data, states=None):
        if data.ndim != 3:
            raise RuntimeError(
                "input must have 3 dimensions, got {}".format(data.ndim))
        if self.batch_first:
            data = jnp.transpose(data, (1, 0, 2))       # -> (T, B, I)
        T, B, _ = data.shape
        H = self.hidden_size
        L = self.num_layers

        if states is None:
            hid_state = jnp.zeros((L, B, H), jnp.float32)
            cell_state = jnp.zeros((L, B, H), jnp.float32)
        else:
            hid_state, cell_state = states
            hid_state = jnp.asarray(hid_state, jnp.float32)
            cell_state = jnp.asarray(cell_state, jnp.float32)

        # --- batch padding (sublane alignment; 16 for bf16 packing) ----------
        align = 16 if self.compute_dtype == jnp.bfloat16 else 8
        Bp = _round_up(B, align)
        if Bp >= 512:                     # large batch: split blocks (v7x 2 TCs)
            Bp = _round_up(Bp, 256)
            bblk = 256
        else:
            bblk = Bp

        # --- VMEM-aware time chunk + explicit vmem limit ----------------------
        itemsize = jnp.dtype(self.compute_dtype).itemsize
        in_feat_max = max(self.input_size, H)
        cap = _vmem_capacity_bytes()
        chunk, Tp = _choose_chunk(T, bblk, in_feat_max, H, itemsize,
                                  cap // 2, self.max_chunk)
        est = _estimate_vmem_bytes(chunk, bblk, in_feat_max, H, itemsize, True)
        vmem_limit = int(min(cap * 9 // 10, max(2 * est, 48 * _MIB)))
        tail_valid = T - (Tp // chunk - 1) * chunk

        pad_b = Bp - B
        pad_t = Tp - T
        x = data.astype(self.compute_dtype)
        if pad_b or pad_t:
            x = jnp.pad(x, ((0, pad_t), (0, pad_b), (0, 0)))
        if pad_b:
            hid_p = jnp.pad(hid_state, ((0, 0), (0, pad_b), (0, 0)))
            cell_p = jnp.pad(cell_state, ((0, 0), (0, pad_b), (0, 0)))
        else:
            hid_p, cell_p = hid_state, cell_state

        out_hstates, out_cstates = [], []
        for layer_i in range(L):
            wih_t, whh_t, bias2d = self.kernel_params[layer_i]
            x, hN, cN = _run_lstm_layer(
                x, wih_t, whh_t, bias2d, hid_p[layer_i], cell_p[layer_i],
                hidden=H, bblk=bblk, chunk=chunk, tail_valid=tail_valid,
                vmem_limit=vmem_limit, out_dtype=self.compute_dtype)
            out_hstates.append(hN[None, :B])
            out_cstates.append(cN[None, :B])

        out = x[:T, :B].astype(jnp.float32)
        hid_state = jnp.concatenate(out_hstates, axis=0)
        cell_state = jnp.concatenate(out_cstates, axis=0)
        if self.batch_first:
            out = jnp.transpose(out, (1, 0, 2))
        return out, (hid_state, cell_state)


# ---------------------------------------------------------------------------
# Pure-JAX reference (time-major, original gate order) for sanity checking
# ---------------------------------------------------------------------------
def _reference_lstm(model, data, states=None):
    T, B, _ = data.shape
    H = model.hidden_size
    if states is None:
        h_all = jnp.zeros((model.num_layers, B, H), jnp.float32)
        c_all = jnp.zeros((model.num_layers, B, H), jnp.float32)
    else:
        h_all, c_all = states
    x = data
    hs, cs = [], []
    for li, (w_ih, w_hh, b_ih, b_hh) in enumerate(model.params):
        h, c = h_all[li], c_all[li]
        outs = []
        for t in range(T):
            g = x[t] @ w_ih.T + b_ih + h @ w_hh.T + b_hh
            i = jax.nn.sigmoid(g[:, 0 * H:1 * H])
            f = jax.nn.sigmoid(g[:, 1 * H:2 * H])
            gg = jnp.tanh(g[:, 2 * H:3 * H])
            o = jax.nn.sigmoid(g[:, 3 * H:4 * H])
            c = f * c + i * gg
            h = o * jnp.tanh(c)
            outs.append(h)
        x = jnp.stack(outs, axis=0)
        hs.append(h[None])
        cs.append(c[None])
    return x, (jnp.concatenate(hs, 0), jnp.concatenate(cs, 0))


if __name__ == "__main__":
    SEQ, BATCH, INPUT, HIDDEN, LAYERS = 8, 2, 16, 32, 2
    key = jax.random.PRNGKey(0)
    k_data, k_data2, k_h, k_c = jax.random.split(key, 4)

    # 1) float32 path, T divisible by the chunk.
    model_f32 = PallasLSTM(INPUT, HIDDEN, LAYERS, bias=True, batch_first=False,
                           compute_dtype=jnp.float32, seed=0)
    data = jax.random.normal(k_data, (SEQ, BATCH, INPUT), jnp.float32)
    out, (h_n, c_n) = model_f32(data)
    jax.block_until_ready((out, h_n, c_n))
    ref_out, (ref_h, ref_c) = _reference_lstm(model_f32, data)
    assert out.shape == (SEQ, BATCH, HIDDEN)
    assert h_n.shape == (LAYERS, BATCH, HIDDEN)
    assert c_n.shape == (LAYERS, BATCH, HIDDEN)
    assert jnp.allclose(out, ref_out, atol=1e-5)
    assert jnp.allclose(h_n, ref_h, atol=1e-5)
    assert jnp.allclose(c_n, ref_c, atol=1e-5)

    # 2) bf16 MXU-operand path (f32 accumulation, f32 gate math), batch_first.
    model_bf16 = PallasLSTM(INPUT, HIDDEN, LAYERS, bias=True, batch_first=True,
                            compute_dtype=jnp.bfloat16, seed=1)
    data_bf = jax.random.normal(k_data2, (BATCH, SEQ, INPUT), jnp.float32)
    out_bf, (h_bf, c_bf) = model_bf16(data_bf)
    jax.block_until_ready((out_bf, h_bf, c_bf))
    ref_out_bf, (ref_h_bf, ref_c_bf) = _reference_lstm(
        model_bf16, jnp.transpose(data_bf, (1, 0, 2)))
    ref_out_bf = jnp.transpose(ref_out_bf, (1, 0, 2))
    assert out_bf.shape == (BATCH, SEQ, HIDDEN)
    assert float(jnp.max(jnp.abs(out_bf - ref_out_bf))) < 5e-2
    assert float(jnp.max(jnp.abs(h_bf - ref_h_bf))) < 5e-2
    assert float(jnp.max(jnp.abs(c_bf - ref_c_bf))) < 5e-2

    # 3) odd sequence length + explicit initial states: exercises the time
    #    padding path and the padded-step state masking (small forced chunk).
    model_pad = PallasLSTM(INPUT, HIDDEN, LAYERS, bias=True, batch_first=False,
                           compute_dtype=jnp.float32, max_chunk=4, seed=2)
    T_ODD = 7
    data_odd = jax.random.normal(k_data, (T_ODD, BATCH, INPUT), jnp.float32)
    h0 = 0.1 * jax.random.normal(k_h, (LAYERS, BATCH, HIDDEN), jnp.float32)
    c0 = 0.1 * jax.random.normal(k_c, (LAYERS, BATCH, HIDDEN), jnp.float32)
    out_o, (h_o, c_o) = model_pad(data_odd, (h0, c0))
    jax.block_until_ready((out_o, h_o, c_o))
    ref_out_o, (ref_h_o, ref_c_o) = _reference_lstm(model_pad, data_odd, (h0, c0))
    assert out_o.shape == (T_ODD, BATCH, HIDDEN)
    assert jnp.allclose(out_o, ref_out_o, atol=1e-5)
    assert jnp.allclose(h_o, ref_h_o, atol=1e-5)
    assert jnp.allclose(c_o, ref_c_o, atol=1e-5)

    print("KERNEL_OK")
</pallas_src>

<mosaic_0001>
module attributes {stable_mosaic.version = 11 : i64} {
  func.func @_lstm_layer_kernel(%arg0: i32, %arg1: i32, %arg2: memref<8x8x16xf32, #tpu.memory_space<vmem>>, %arg3: memref<16x128xf32, #tpu.memory_space<vmem>>, %arg4: memref<32x128xf32, #tpu.memory_space<vmem>>, %arg5: memref<1x128xf32, #tpu.memory_space<vmem>>, %arg6: memref<8x32xf32, #tpu.memory_space<vmem>>, %arg7: memref<8x32xf32, #tpu.memory_space<vmem>>, %arg8: memref<8x8x32xf32, #tpu.memory_space<vmem>>, %arg9: memref<8x32xf32, #tpu.memory_space<vmem>>, %arg10: memref<8x32xf32, #tpu.memory_space<vmem>>) attributes {dimension_semantics = [#tpu.dimension_semantics<parallel>, #tpu.dimension_semantics<arbitrary>], iteration_bounds = array<i64: 1, 1>, scalar_prefetch = 0 : i64, scratch_operands = 0 : i64, tpu.core_type = #tpu.core_type<tc>, window_params = [{transform_indices = @transform_0, window_bounds = array<i64: 8, 8, 16>}, {pipeline_mode = #tpu.pipeline_mode<synchronous>, transform_indices = @transform_1, window_bounds = array<i64: 16, 128>}, {pipeline_mode = #tpu.pipeline_mode<synchronous>, transform_indices = @transform_2, window_bounds = array<i64: 32, 128>}, {pipeline_mode = #tpu.pipeline_mode<synchronous>, transform_indices = @transform_3, window_bounds = array<i64: 1, 128>}, {pipeline_mode = #tpu.pipeline_mode<synchronous>, transform_indices = @transform_4, window_bounds = array<i64: 8, 32>}, {pipeline_mode = #tpu.pipeline_mode<synchronous>, transform_indices = @transform_5, window_bounds = array<i64: 8, 32>}, {transform_indices = @transform_6, window_bounds = array<i64: 8, 8, 32>}, {transform_indices = @transform_7, window_bounds = array<i64: 8, 32>}, {transform_indices = @transform_8, window_bounds = array<i64: 8, 32>}]} {
    %c0_i32 = arith.constant 0 : i32
    %0 = arith.cmpi eq, %arg1, %c0_i32 : i32
    %1 = arith.extui %0 : i1 to i32
    %c0_i32_0 = arith.constant 0 : i32
    %2 = arith.cmpi ne, %1, %c0_i32_0 : i32
    scf.if %2 {
      %c0_66 = arith.constant 0 : index
      %c0_67 = arith.constant 0 : index
      %216 = vector.load %arg6[%c0_66, %c0_67] : memref<8x32xf32, #tpu.memory_space<vmem>>, vector<8x32xf32>
      %c0_68 = arith.constant 0 : index
      %c0_69 = arith.constant 0 : index
      %217 = vector.load %arg9[%c0_68, %c0_69] : memref<8x32xf32, #tpu.memory_space<vmem>>, vector<8x32xf32>
      tpu.vector_store %arg9[%c0_68, %c0_69], %216 {strides = array<i32>} : memref<8x32xf32, #tpu.memory_space<vmem>>, vector<8x32xf32>,
      %c0_70 = arith.constant 0 : index
      %c0_71 = arith.constant 0 : index
      %218 = vector.load %arg7[%c0_70, %c0_71] : memref<8x32xf32, #tpu.memory_space<vmem>>, vector<8x32xf32>
      %c0_72 = arith.constant 0 : index
      %c0_73 = arith.constant 0 : index
      %219 = vector.load %arg10[%c0_72, %c0_73] : memref<8x32xf32, #tpu.memory_space<vmem>>, vector<8x32xf32>
      tpu.vector_store %arg10[%c0_72, %c0_73], %218 {strides = array<i32>} : memref<8x32xf32, #tpu.memory_space<vmem>>, vector<8x32xf32>,
    } else {
    }
    %c0 = arith.constant 0 : index
    %c0_1 = arith.constant 0 : index
    %c0_2 = arith.constant 0 : index
    %3 = vector.load %arg2[%c0, %c0_1, %c0_2] : memref<8x8x16xf32, #tpu.memory_space<vmem>>, vector<8x8x16xf32>
    %4 = vector.shape_cast %3 : vector<8x8x16xf32> to vector<64x16xf32>
    %c0_3 = arith.constant 0 : index
    %c0_4 = arith.constant 0 : index
    %5 = vector.load %arg3[%c0_3, %c0_4] : memref<16x128xf32, #tpu.memory_space<vmem>>, vector<16x128xf32>
    %cst = arith.constant dense<0.000000e+00> : vector<64x128xf32>
    %6 = tpu.matmul %4, %5, %cst {dimension_numbers = #tpu.dot_dimension_numbers<[1], [0], [0], [1], [0, 0, 1, 1], [], []>} : vector<64x16xf32>, vector<16x128xf32>, vector<64x128xf32> -> vector<64x128xf32>
    %c0_5 = arith.constant 0 : index
    %c0_6 = arith.constant 0 : index
    %7 = vector.load %arg5[%c0_5, %c0_6] : memref<1x128xf32, #tpu.memory_space<vmem>>, vector<1x128xf32>
    %8 = vector.broadcast %7 : vector<1x128xf32> to vector<64x128xf32>
    %9 = arith.addf %6, %8 : vector<64x128xf32>
    %10 = vector.shape_cast %9 : vector<64x128xf32> to vector<8x8x128xf32>
    %c0_7 = arith.constant 0 : index
    %c0_8 = arith.constant 0 : index
    %11 = vector.load %arg4[%c0_7, %c0_8] : memref<32x128xf32, #tpu.memory_space<vmem>>, vector<32x128xf32>
    %c0_9 = arith.constant 0 : index
    %c0_10 = arith.constant 0 : index
    %12 = vector.load %arg9[%c0_9, %c0_10] : memref<8x32xf32, #tpu.memory_space<vmem>>, vector<8x32xf32>
    %c0_11 = arith.constant 0 : index
    %c0_12 = arith.constant 0 : index
    %13 = vector.load %arg10[%c0_11, %c0_12] : memref<8x32xf32, #tpu.memory_space<vmem>>, vector<8x32xf32>
    %14 = vector.extract_strided_slice %10 {offsets = [0, 0, 0], sizes = [1, 8, 128], strides = [1, 1, 1]} : vector<8x8x128xf32> to vector<1x8x128xf32>
    %15 = vector.shape_cast %14 : vector<1x8x128xf32> to vector<8x128xf32>
    %cst_13 = arith.constant dense<0.000000e+00> : vector<8x128xf32>
    %16 = tpu.matmul %12, %11, %cst_13 {dimension_numbers = #tpu.dot_dimension_numbers<[1], [0], [0], [1], [0, 0, 1, 1], [], []>} : vector<8x32xf32>, vector<32x128xf32>, vector<8x128xf32> -> vector<8x128xf32>
    %17 = arith.addf %15, %16 : vector<8x128xf32>
    %18 = arith.negf %17 : vector<8x128xf32>
    %19 = math.exp %18 : vector<8x128xf32>
    %cst_14 = arith.constant 1.000000e+00 : f32
    %20 = vector.broadcast %cst_14 : f32 to vector<8x128xf32>
    %21 = arith.addf %20, %19 : vector<8x128xf32>
    %22 = arith.divf %20, %21 : vector<8x128xf32>
    %23 = vector.extract_strided_slice %22 {offsets = [0, 0], sizes = [8, 32], strides = [1, 1]} : vector<8x128xf32> to vector<8x32xf32>
    %24 = vector.extract_strided_slice %22 {offsets = [0, 32], sizes = [8, 32], strides = [1, 1]} : vector<8x128xf32> to vector<8x32xf32>
    %25 = vector.extract_strided_slice %22 {offsets = [0, 64], sizes = [8, 32], strides = [1, 1]} : vector<8x128xf32> to vector<8x32xf32>
    %26 = vector.extract_strided_slice %22 {offsets = [0, 96], sizes = [8, 32], strides = [1, 1]} : vector<8x128xf32> to vector<8x32xf32>
    %cst_15 = arith.constant 2.000000e+00 : f32
    %27 = vector.broadcast %cst_15 : f32 to vector<8x32xf32>
    %28 = arith.mulf %27, %26 : vector<8x32xf32>
    %cst_16 = arith.constant 1.000000e+00 : f32
    %29 = vector.broadcast %cst_16 : f32 to vector<8x32xf32>
    %30 = arith.subf %28, %29 : vector<8x32xf32>
    %31 = arith.mulf %24, %13 : vector<8x32xf32>
    %32 = arith.mulf %23, %30 : vector<8x32xf32>
    %33 = arith.addf %31, %32 : vector<8x32xf32>
    %34 = math.tanh %33 : vector<8x32xf32>
    %35 = arith.mulf %25, %34 : vector<8x32xf32>
    %c0_17 = arith.constant 0 : index
    %c0_18 = arith.constant 0 : index
    %c0_19 = arith.constant 0 : index
    %36 = vector.load %arg8[%c0_17, %c0_18, %c0_19] : memref<8x8x32xf32, #tpu.memory_space<vmem>>, vector<1x8x32xf32>
    %37 = vector.shape_cast %36 : vector<1x8x32xf32> to vector<8x32xf32>
    %38 = vector.shape_cast %35 : vector<8x32xf32> to vector<1x8x32xf32>
    tpu.vector_store %arg8[%c0_17, %c0_18, %c0_19], %38 {strides = array<i32>} : memref<8x8x32xf32, #tpu.memory_space<vmem>>, vector<1x8x32xf32>,
    %39 = vector.extract_strided_slice %10 {offsets = [1, 0, 0], sizes = [1, 8, 128], strides = [1, 1, 1]} : vector<8x8x128xf32> to vector<1x8x128xf32>
    %40 = vector.shape_cast %39 : vector<1x8x128xf32> to vector<8x128xf32>
    %cst_20 = arith.constant dense<0.000000e+00> : vector<8x128xf32>
    %41 = tpu.matmul %35, %11, %cst_20 {dimension_numbers = #tpu.dot_dimension_numbers<[1], [0], [0], [1], [0, 0, 1, 1], [], []>} : vector<8x32xf32>, vector<32x128xf32>, vector<8x128xf32> -> vector<8x128xf32>
    %42 = arith.addf %40, %41 : vector<8x128xf32>
    %43 = arith.negf %42 : vector<8x128xf32>
    %44 = math.exp %43 : vector<8x128xf32>
    %cst_21 = arith.constant 1.000000e+00 : f32
    %45 = vector.broadcast %cst_21 : f32 to vector<8x128xf32>
    %46 = arith.addf %45, %44 : vector<8x128xf32>
    %47 = arith.divf %45, %46 : vector<8x128xf32>
    %48 = vector.extract_strided_slice %47 {offsets = [0, 0], sizes = [8, 32], strides = [1, 1]} : vector<8x128xf32> to vector<8x32xf32>
    %49 = vector.extract_strided_slice %47 {offsets = [0, 32], sizes = [8, 32], strides = [1, 1]} : vector<8x128xf32> to vector<8x32xf32>
    %50 = vector.extract_strided_slice %47 {offsets = [0, 64], sizes = [8, 32], strides = [1, 1]} : vector<8x128xf32> to vector<8x32xf32>
    %51 = vector.extract_strided_slice %47 {offsets = [0, 96], sizes = [8, 32], strides = [1, 1]} : vector<8x128xf32> to vector<8x32xf32>
    %cst_22 = arith.constant 2.000000e+00 : f32
    %52 = vector.broadcast %cst_22 : f32 to vector<8x32xf32>
    %53 = arith.mulf %52, %51 : vector<8x32xf32>
    %cst_23 = arith.constant 1.000000e+00 : f32
    %54 = vector.broadcast %cst_23 : f32 to vector<8x32xf32>
    %55 = arith.subf %53, %54 : vector<8x32xf32>
    %56 = arith.mulf %49, %33 : vector<8x32xf32>
    %57 = arith.mulf %48, %55 : vector<8x32xf32>
    %58 = arith.addf %56, %57 : vector<8x32xf32>
    %59 = math.tanh %58 : vector<8x32xf32>
    %60 = arith.mulf %50, %59 : vector<8x32xf32>
    %c1 = arith.constant 1 : index
    %c0_24 = arith.constant 0 : index
    %c0_25 = arith.constant 0 : index
    %61 = vector.load %arg8[%c1, %c0_24, %c0_25] : memref<8x8x32xf32, #tpu.memory_space<vmem>>, vector<1x8x32xf32>
    %62 = vector.shape_cast %61 : vector<1x8x32xf32> to vector<8x32xf32>
    %63 = vector.shape_cast %60 : vector<8x32xf32> to vector<1x8x32xf32>
    tpu.vector_store %arg8[%c1, %c0_24, %c0_25], %63 {strides = array<i32>} : memref<8x8x32xf32, #tpu.memory_space<vmem>>, vector<1x8x32xf32>,
    %64 = vector.extract_strided_slice %10 {offsets = [2, 0, 0], sizes = [1, 8, 128], strides = [1, 1, 1]} : vector<8x8x128xf32> to vector<1x8x128xf32>
    %65 = vector.shape_cast %64 : vector<1x8x128xf32> to vector<8x128xf32>
    %cst_26 = arith.constant dense<0.000000e+00> : vector<8x128xf32>
    %66 = tpu.matmul %60, %11, %cst_26 {dimension_numbers = #tpu.dot_dimension_numbers<[1], [0], [0], [1], [0, 0, 1, 1], [], []>} : vector<8x32xf32>, vector<32x128xf32>, vector<8x128xf32> -> vector<8x128xf32>
    %67 = arith.addf %65, %66 : vector<8x128xf32>
    %68 = arith.negf %67 : vector<8x128xf32>
    %69 = math.exp %68 : vector<8x128xf32>
    %cst_27 = arith.constant 1.000000e+00 : f32
    %70 = vector.broadcast %cst_27 : f32 to vector<8x128xf32>
    %71 = arith.addf %70, %69 : vector<8x128xf32>
    %72 = arith.divf %70, %71 : vector<8x128xf32>
    %73 = vector.extract_strided_slice %72 {offsets = [0, 0], sizes = [8, 32], strides = [1, 1]} : vector<8x128xf32> to vector<8x32xf32>
    %74 = vector.extract_strided_slice %72 {offsets = [0, 32], sizes = [8, 32], strides = [1, 1]} : vector<8x128xf32> to vector<8x32xf32>
    %75 = vector.extract_strided_slice %72 {offsets = [0, 64], sizes = [8, 32], strides = [1, 1]} : vector<8x128xf32> to vector<8x32xf32>
    %76 = vector.extract_strided_slice %72 {offsets = [0, 96], sizes = [8, 32], strides = [1, 1]} : vector<8x128xf32> to vector<8x32xf32>
    %cst_28 = arith.constant 2.000000e+00 : f32
    %77 = vector.broadcast %cst_28 : f32 to vector<8x32xf32>
    %78 = arith.mulf %77, %76 : vector<8x32xf32>
    %cst_29 = arith.constant 1.000000e+00 : f32
    %79 = vector.broadcast %cst_29 : f32 to vector<8x32xf32>
    %80 = arith.subf %78, %79 : vector<8x32xf32>
    %81 = arith.mulf %74, %58 : vector<8x32xf32>
    %82 = arith.mulf %73, %80 : vector<8x32xf32>
    %83 = arith.addf %81, %82 : vector<8x32xf32>
    %84 = math.tanh %83 : vector<8x32xf32>
    %85 = arith.mulf %75, %84 : vector<8x32xf32>
    %c2 = arith.constant 2 : index
    %c0_30 = arith.constant 0 : index
    %c0_31 = arith.constant 0 : index
    %86 = vector.load %arg8[%c2, %c0_30, %c0_31] : memref<8x8x32xf32, #tpu.memory_space<vmem>>, vector<1x8x32xf32>
    %87 = vector.shape_cast %86 : vector<1x8x32xf32> to vector<8x32xf32>
    %88 = vector.shape_cast %85 : vector<8x32xf32> to vector<1x8x32xf32>
    tpu.vector_store %arg8[%c2, %c0_30, %c0_31], %88 {strides = array<i32>} : memref<8x8x32xf32, #tpu.memory_space<vmem>>, vector<1x8x32xf32>,
    %89 = vector.extract_strided_slice %10 {offsets = [3, 0, 0], sizes = [1, 8, 128], strides = [1, 1, 1]} : vector<8x8x128xf32> to vector<1x8x128xf32>
    %90 = vector.shape_cast %89 : vector<1x8x128xf32> to vector<8x128xf32>
    %cst_32 = arith.constant dense<0.000000e+00> : vector<8x128xf32>
    %91 = tpu.matmul %85, %11, %cst_32 {dimension_numbers = #tpu.dot_dimension_numbers<[1], [0], [0], [1], [0, 0, 1, 1], [], []>} : vector<8x32xf32>, vector<32x128xf32>, vector<8x128xf32> -> vector<8x128xf32>
    %92 = arith.addf %90, %91 : vector<8x128xf32>
    %93 = arith.negf %92 : vector<8x128xf32>
    %94 = math.exp %93 : vector<8x128xf32>
    %cst_33 = arith.constant 1.000000e+00 : f32
    %95 = vector.broadcast %cst_33 : f32 to vector<8x128xf32>
    %96 = arith.addf %95, %94 : vector<8x128xf32>
    %97 = arith.divf %95, %96 : vector<8x128xf32>
    %98 = vector.extract_strided_slice %97 {offsets = [0, 0], sizes = [8, 32], strides = [1, 1]} : vector<8x128xf32> to vector<8x32xf32>
    %99 = vector.extract_strided_slice %97 {offsets = [0, 32], sizes = [8, 32], strides = [1, 1]} : vector<8x128xf32> to vector<8x32xf32>
    %100 = vector.extract_strided_slice %97 {offsets = [0, 64], sizes = [8, 32], strides = [1, 1]} : vector<8x128xf32> to vector<8x32xf32>
    %101 = vector.extract_strided_slice %97 {offsets = [0, 96], sizes = [8, 32], strides = [1, 1]} : vector<8x128xf32> to vector<8x32xf32>
    %cst_34 = arith.constant 2.000000e+00 : f32
    %102 = vector.broadcast %cst_34 : f32 to vector<8x32xf32>
    %103 = arith.mulf %102, %101 : vector<8x32xf32>
    %cst_35 = arith.constant 1.000000e+00 : f32
    %104 = vector.broadcast %cst_35 : f32 to vector<8x32xf32>
    %105 = arith.subf %103, %104 : vector<8x32xf32>
    %106 = arith.mulf %99, %83 : vector<8x32xf32>
    %107 = arith.mulf %98, %105 : vector<8x32xf32>
    %108 = arith.addf %106, %107 : vector<8x32xf32>
    %109 = math.tanh %108 : vector<8x32xf32>
    %110 = arith.mulf %100, %109 : vector<8x32xf32>
    %c3 = arith.constant 3 : index
    %c0_36 = arith.constant 0 : index
    %c0_37 = arith.constant 0 : index
    %111 = vector.load %arg8[%c3, %c0_36, %c0_37] : memref<8x8x32xf32, #tpu.memory_space<vmem>>, vector<1x8x32xf32>
    %112 = vector.shape_cast %111 : vector<1x8x32xf32> to vector<8x32xf32>
    %113 = vector.shape_cast %110 : vector<8x32xf32> to vector<1x8x32xf32>
    tpu.vector_store %arg8[%c3, %c0_36, %c0_37], %113 {strides = array<i32>} : memref<8x8x32xf32, #tpu.memory_space<vmem>>, vector<1x8x32xf32>,
    %114 = vector.extract_strided_slice %10 {offsets = [4, 0, 0], sizes = [1, 8, 128], strides = [1, 1, 1]} : vector<8x8x128xf32> to vector<1x8x128xf32>
    %115 = vector.shape_cast %114 : vector<1x8x128xf32> to vector<8x128xf32>
    %cst_38 = arith.constant dense<0.000000e+00> : vector<8x128xf32>
    %116 = tpu.matmul %110, %11, %cst_38 {dimension_numbers = #tpu.dot_dimension_numbers<[1], [0], [0], [1], [0, 0, 1, 1], [], []>} : vector<8x32xf32>, vector<32x128xf32>, vector<8x128xf32> -> vector<8x128xf32>
    %117 = arith.addf %115, %116 : vector<8x128xf32>
    %118 = arith.negf %117 : vector<8x128xf32>
    %119 = math.exp %118 : vector<8x128xf32>
    %cst_39 = arith.constant 1.000000e+00 : f32
    %120 = vector.broadcast %cst_39 : f32 to vector<8x128xf32>
    %121 = arith.addf %120, %119 : vector<8x128xf32>
    %122 = arith.divf %120, %121 : vector<8x128xf32>
    %123 = vector.extract_strided_slice %122 {offsets = [0, 0], sizes = [8, 32], strides = [1, 1]} : vector<8x128xf32> to vector<8x32xf32>
    %124 = vector.extract_strided_slice %122 {offsets = [0, 32], sizes = [8, 32], strides = [1, 1]} : vector<8x128xf32> to vector<8x32xf32>
    %125 = vector.extract_strided_slice %122 {offsets = [0, 64], sizes = [8, 32], strides = [1, 1]} : vector<8x128xf32> to vector<8x32xf32>
    %126 = vector.extract_strided_slice %122 {offsets = [0, 96], sizes = [8, 32], strides = [1, 1]} : vector<8x128xf32> to vector<8x32xf32>
    %cst_40 = arith.constant 2.000000e+00 : f32
    %127 = vector.broadcast %cst_40 : f32 to vector<8x32xf32>
    %128 = arith.mulf %127, %126 : vector<8x32xf32>
    %cst_41 = arith.constant 1.000000e+00 : f32
    %129 = vector.broadcast %cst_41 : f32 to vector<8x32xf32>
    %130 = arith.subf %128, %129 : vector<8x32xf32>
    %131 = arith.mulf %124, %108 : vector<8x32xf32>
    %132 = arith.mulf %123, %130 : vector<8x32xf32>
    %133 = arith.addf %131, %132 : vector<8x32xf32>
    %134 = math.tanh %133 : vector<8x32xf32>
    %135 = arith.mulf %125, %134 : vector<8x32xf32>
    %c4 = arith.constant 4 : index
    %c0_42 = arith.constant 0 : index
    %c0_43 = arith.constant 0 : index
    %136 = vector.load %arg8[%c4, %c0_42, %c0_43] : memref<8x8x32xf32, #tpu.memory_space<vmem>>, vector<1x8x32xf32>
    %137 = vector.shape_cast %136 : vector<1x8x32xf32> to vector<8x32xf32>
    %138 = vector.shape_cast %135 : vector<8x32xf32> to vector<1x8x32xf32>
    tpu.vector_store %arg8[%c4, %c0_42, %c0_43], %138 {strides = array<i32>} : memref<8x8x32xf32, #tpu.memory_space<vmem>>, vector<1x8x32xf32>,
    %139 = vector.extract_strided_slice %10 {offsets = [5, 0, 0], sizes = [1, 8, 128], strides = [1, 1, 1]} : vector<8x8x128xf32> to vector<1x8x128xf32>
    %140 = vector.shape_cast %139 : vector<1x8x128xf32> to vector<8x128xf32>
    %cst_44 = arith.constant dense<0.000000e+00> : vector<8x128xf32>
    %141 = tpu.matmul %135, %11, %cst_44 {dimension_numbers = #tpu.dot_dimension_numbers<[1], [0], [0], [1], [0, 0, 1, 1], [], []>} : vector<8x32xf32>, vector<32x128xf32>, vector<8x128xf32> -> vector<8x128xf32>
    %142 = arith.addf %140, %141 : vector<8x128xf32>
    %143 = arith.negf %142 : vector<8x128xf32>
    %144 = math.exp %143 : vector<8x128xf32>
    %cst_45 = arith.constant 1.000000e+00 : f32
    %145 = vector.broadcast %cst_45 : f32 to vector<8x128xf32>
    %146 = arith.addf %145, %144 : vector<8x128xf32>
    %147 = arith.divf %145, %146 : vector<8x128xf32>
    %148 = vector.extract_strided_slice %147 {offsets = [0, 0], sizes = [8, 32], strides = [1, 1]} : vector<8x128xf32> to vector<8x32xf32>
    %149 = vector.extract_strided_slice %147 {offsets = [0, 32], sizes = [8, 32], strides = [1, 1]} : vector<8x128xf32> to vector<8x32xf32>
    %150 = vector.extract_strided_slice %147 {offsets = [0, 64], sizes = [8, 32], strides = [1, 1]} : vector<8x128xf32> to vector<8x32xf32>
    %151 = vector.extract_strided_slice %147 {offsets = [0, 96], sizes = [8, 32], strides = [1, 1]} : vector<8x128xf32> to vector<8x32xf32>
    %cst_46 = arith.constant 2.000000e+00 : f32
    %152 = vector.broadcast %cst_46 : f32 to vector<8x32xf32>
    %153 = arith.mulf %152, %151 : vector<8x32xf32>
    %cst_47 = arith.constant 1.000000e+00 : f32
    %154 = vector.broadcast %cst_47 : f32 to vector<8x32xf32>
    %155 = arith.subf %153, %154 : vector<8x32xf32>
    %156 = arith.mulf %149, %133 : vector<8x32xf32>
    %157 = arith.mulf %148, %155 : vector<8x32xf32>
    %158 = arith.addf %156, %157 : vector<8x32xf32>
    %159 = math.tanh %158 : vector<8x32xf32>
    %160 = arith.mulf %150, %159 : vector<8x32xf32>
    %c5 = arith.constant 5 : index
    %c0_48 = arith.constant 0 : index
    %c0_49 = arith.constant 0 : index
    %161 = vector.load %arg8[%c5, %c0_48, %c0_49] : memref<8x8x32xf32, #tpu.memory_space<vmem>>, vector<1x8x32xf32>
    %162 = vector.shape_cast %161 : vector<1x8x32xf32> to vector<8x32xf32>
    %163 = vector.shape_cast %160 : vector<8x32xf32> to vector<1x8x32xf32>
    tpu.vector_store %arg8[%c5, %c0_48, %c0_49], %163 {strides = array<i32>} : memref<8x8x32xf32, #tpu.memory_space<vmem>>, vector<1x8x32xf32>,
    %164 = vector.extract_strided_slice %10 {offsets = [6, 0, 0], sizes = [1, 8, 128], strides = [1, 1, 1]} : vector<8x8x128xf32> to vector<1x8x128xf32>
    %165 = vector.shape_cast %164 : vector<1x8x128xf32> to vector<8x128xf32>
    %cst_50 = arith.constant dense<0.000000e+00> : vector<8x128xf32>
    %166 = tpu.matmul %160, %11, %cst_50 {dimension_numbers = #tpu.dot_dimension_numbers<[1], [0], [0], [1], [0, 0, 1, 1], [], []>} : vector<8x32xf32>, vector<32x128xf32>, vector<8x128xf32> -> vector<8x128xf32>
    %167 = arith.addf %165, %166 : vector<8x128xf32>
    %168 = arith.negf %167 : vector<8x128xf32>
    %169 = math.exp %168 : vector<8x128xf32>
    %cst_51 = arith.constant 1.000000e+00 : f32
    %170 = vector.broadcast %cst_51 : f32 to vector<8x128xf32>
    %171 = arith.addf %170, %169 : vector<8x128xf32>
    %172 = arith.divf %170, %171 : vector<8x128xf32>
    %173 = vector.extract_strided_slice %172 {offsets = [0, 0], sizes = [8, 32], strides = [1, 1]} : vector<8x128xf32> to vector<8x32xf32>
    %174 = vector.extract_strided_slice %172 {offsets = [0, 32], sizes = [8, 32], strides = [1, 1]} : vector<8x128xf32> to vector<8x32xf32>
    %175 = vector.extract_strided_slice %172 {offsets = [0, 64], sizes = [8, 32], strides = [1, 1]} : vector<8x128xf32> to vector<8x32xf32>
    %176 = vector.extract_strided_slice %172 {offsets = [0, 96], sizes = [8, 32], strides = [1, 1]} : vector<8x128xf32> to vector<8x32xf32>
    %cst_52 = arith.constant 2.000000e+00 : f32
    %177 = vector.broadcast %cst_52 : f32 to vector<8x32xf32>
    %178 = arith.mulf %177, %176 : vector<8x32xf32>
    %cst_53 = arith.constant 1.000000e+00 : f32
    %179 = vector.broadcast %cst_53 : f32 to vector<8x32xf32>
    %180 = arith.subf %178, %179 : vector<8x32xf32>
    %181 = arith.mulf %174, %158 : vector<8x32xf32>
    %182 = arith.mulf %173, %180 : vector<8x32xf32>
    %183 = arith.addf %181, %182 : vector<8x32xf32>
    %184 = math.tanh %183 : vector<8x32xf32>
    %185 = arith.mulf %175, %184 : vector<8x32xf32>
    %c6 = arith.constant 6 : index
    %c0_54 = arith.constant 0 : index
    %c0_55 = arith.constant 0 : index
    %186 = vector.load %arg8[%c6, %c0_54, %c0_55] : memref<8x8x32xf32, #tpu.memory_space<vmem>>, vector<1x8x32xf32>
    %187 = vector.shape_cast %186 : vector<1x8x32xf32> to vector<8x32xf32>
    %188 = vector.shape_cast %185 : vector<8x32xf32> to vector<1x8x32xf32>
    tpu.vector_store %arg8[%c6, %c0_54, %c0_55], %188 {strides = array<i32>} : memref<8x8x32xf32, #tpu.memory_space<vmem>>, vector<1x8x32xf32>,
    %189 = vector.extract_strided_slice %10 {offsets = [7, 0, 0], sizes = [1, 8, 128], strides = [1, 1, 1]} : vector<8x8x128xf32> to vector<1x8x128xf32>
    %190 = vector.shape_cast %189 : vector<1x8x128xf32> to vector<8x128xf32>
    %cst_56 = arith.constant dense<0.000000e+00> : vector<8x128xf32>
    %191 = tpu.matmul %185, %11, %cst_56 {dimension_numbers = #tpu.dot_dimension_numbers<[1], [0], [0], [1], [0, 0, 1, 1], [], []>} : vector<8x32xf32>, vector<32x128xf32>, vector<8x128xf32> -> vector<8x128xf32>
    %192 = arith.addf %190, %191 : vector<8x128xf32>
    %193 = arith.negf %192 : vector<8x128xf32>
    %194 = math.exp %193 : vector<8x128xf32>
    %cst_57 = arith.constant 1.000000e+00 : f32
    %195 = vector.broadcast %cst_57 : f32 to vector<8x128xf32>
    %196 = arith.addf %195, %194 : vector<8x128xf32>
    %197 = arith.divf %195, %196 : vector<8x128xf32>
    %198 = vector.extract_strided_slice %197 {offsets = [0, 0], sizes = [8, 32], strides = [1, 1]} : vector<8x128xf32> to vector<8x32xf32>
    %199 = vector.extract_strided_slice %197 {offsets = [0, 32], sizes = [8, 32], strides = [1, 1]} : vector<8x128xf32> to vector<8x32xf32>
    %200 = vector.extract_strided_slice %197 {offsets = [0, 64], sizes = [8, 32], strides = [1, 1]} : vector<8x128xf32> to vector<8x32xf32>
    %201 = vector.extract_strided_slice %197 {offsets = [0, 96], sizes = [8, 32], strides = [1, 1]} : vector<8x128xf32> to vector<8x32xf32>
    %cst_58 = arith.constant 2.000000e+00 : f32
    %202 = vector.broadcast %cst_58 : f32 to vector<8x32xf32>
    %203 = arith.mulf %202, %201 : vector<8x32xf32>
    %cst_59 = arith.constant 1.000000e+00 : f32
    %204 = vector.broadcast %cst_59 : f32 to vector<8x32xf32>
    %205 = arith.subf %203, %204 : vector<8x32xf32>
    %206 = arith.mulf %199, %183 : vector<8x32xf32>
    %207 = arith.mulf %198, %205 : vector<8x32xf32>
    %208 = arith.addf %206, %207 : vector<8x32xf32>
    %209 = math.tanh %208 : vector<8x32xf32>
    %210 = arith.mulf %200, %209 : vector<8x32xf32>
    %c7 = arith.constant 7 : index
    %c0_60 = arith.constant 0 : index
    %c0_61 = arith.constant 0 : index
    %211 = vector.load %arg8[%c7, %c0_60, %c0_61] : memref<8x8x32xf32, #tpu.memory_space<vmem>>, vector<1x8x32xf32>
    %212 = vector.shape_cast %211 : vector<1x8x32xf32> to vector<8x32xf32>
    %213 = vector.shape_cast %210 : vector<8x32xf32> to vector<1x8x32xf32>
    tpu.vector_store %arg8[%c7, %c0_60, %c0_61], %213 {strides = array<i32>} : memref<8x8x32xf32, #tpu.memory_space<vmem>>, vector<1x8x32xf32>,
    %c0_62 = arith.constant 0 : index
    %c0_63 = arith.constant 0 : index
    %214 = vector.load %arg9[%c0_62, %c0_63] : memref<8x32xf32, #tpu.memory_space<vmem>>, vector<8x32xf32>
    tpu.vector_store %arg9[%c0_62, %c0_63], %210 {strides = array<i32>} : memref<8x32xf32, #tpu.memory_space<vmem>>, vector<8x32xf32>,
    %c0_64 = arith.constant 0 : index
    %c0_65 = arith.constant 0 : index
    %215 = vector.load %arg10[%c0_64, %c0_65] : memref<8x32xf32, #tpu.memory_space<vmem>>, vector<8x32xf32>
    tpu.vector_store %arg10[%c0_64, %c0_65], %208 {strides = array<i32>} : memref<8x32xf32, #tpu.memory_space<vmem>>, vector<8x32xf32>,
    return
  }
  func.func @transform_0(%arg0: i32, %arg1: i32) -> (i32, i32, i32) {
    %c0_i32 = arith.constant 0 : i32
    %c0_i32_0 = arith.constant 0 : i32
    return %arg1, %arg0, %c0_i32 : i32, i32, i32
  }
  func.func @transform_1(%arg0: i32, %arg1: i32) -> (i32, i32) {
    %c0_i32 = arith.constant 0 : i32
    %c0_i32_0 = arith.constant 0 : i32
    %c0_i32_1 = arith.constant 0 : i32
    return %c0_i32, %c0_i32_0 : i32, i32
  }
  func.func @transform_2(%arg0: i32, %arg1: i32) -> (i32, i32) {
    %c0_i32 = arith.constant 0 : i32
    %c0_i32_0 = arith.constant 0 : i32
    %c0_i32_1 = arith.constant 0 : i32
    return %c0_i32, %c0_i32_0 : i32, i32
  }
  func.func @transform_3(%arg0: i32, %arg1: i32) -> (i32, i32) {
    %c0_i32 = arith.constant 0 : i32
    %c0_i32_0 = arith.constant 0 : i32
    %c0_i32_1 = arith.constant 0 : i32
    return %c0_i32, %c0_i32_0 : i32, i32
  }
  func.func @transform_4(%arg0: i32, %arg1: i32) -> (i32, i32) {
    %c0_i32 = arith.constant 0 : i32
    %c0_i32_0 = arith.constant 0 : i32
    return %arg0, %c0_i32 : i32, i32
  }
  func.func @transform_5(%arg0: i32, %arg1: i32) -> (i32, i32) {
    %c0_i32 = arith.constant 0 : i32
    %c0_i32_0 = arith.constant 0 : i32
    return %arg0, %c0_i32 : i32, i32
  }
  func.func @transform_6(%arg0: i32, %arg1: i32) -> (i32, i32, i32) {
    %c0_i32 = arith.constant 0 : i32
    %c0_i32_0 = arith.constant 0 : i32
    return %arg1, %arg0, %c0_i32 : i32, i32, i32
  }
  func.func @transform_7(%arg0: i32, %arg1: i32) -> (i32, i32) {
    %c0_i32 = arith.constant 0 : i32
    %c0_i32_0 = arith.constant 0 : i32
    return %arg0, %c0_i32 : i32, i32
  }
  func.func @transform_8(%arg0: i32, %arg1: i32) -> (i32, i32) {
    %c0_i32 = arith.constant 0 : i32
    %c0_i32_0 = arith.constant 0 : i32
    return %arg0, %c0_i32 : i32, i32
  }
}

module attributes {stable_mosaic.version = 11 : i64} {
  func.func @_lstm_layer_kernel(%arg0: i32, %arg1: i32, %arg2: memref<8x8x16xf32, #tpu.memory_space<vmem>>, %arg3: memref<16x128xf32, #tpu.memory_space<vmem>>, %arg4: memref<32x128xf32, #tpu.memory_space<vmem>>, %arg5: memref<1x128xf32, #tpu.memory_space<vmem>>, %arg6: memref<8x32xf32, #tpu.memory_space<vmem>>, %arg7: memref<8x32xf32, #tpu.memory_space<vmem>>, %arg8: memref<8x8x32xf32, #tpu.memory_space<vmem>>, %arg9: memref<8x32xf32, #tpu.memory_space<vmem>>, %arg10: memref<8x32xf32, #tpu.memory_space<vmem>>) attributes {dimension_semantics = [#tpu.dimension_semantics<parallel>, #tpu.dimension_semantics<arbitrary>], iteration_bounds = array<i64: 1, 1>, scalar_prefetch = 0 : i64, scratch_operands = 0 : i64, tpu.core_type = #tpu.core_type<tc>, window_params = [{transform_indices = @transform_0, window_bounds = array<i64: 8, 8, 16>}, {pipeline_mode = #tpu.pipeline_mode<synchronous>, transform_indices = @transform_1, window_bounds = array<i64: 16, 128>}, {pipeline_mode = #tpu.pipeline_mode<synchronous>, transform_indices = @transform_2, window_bounds = array<i64: 32, 128>}, {pipeline_mode = #tpu.pipeline_mode<synchronous>, transform_indices = @transform_3, window_bounds = array<i64: 1, 128>}, {transform_indices = @transform_4, window_bounds = array<i64: 8, 32>}, {transform_indices = @transform_5, window_bounds = array<i64: 8, 32>}, {transform_indices = @transform_6, window_bounds = array<i64: 8, 8, 32>}, {transform_indices = @transform_7, window_bounds = array<i64: 8, 32>}, {transform_indices = @transform_8, window_bounds = array<i64: 8, 32>}]} {
    %c0_i32 = arith.constant 0 : i32
    %0 = arith.cmpi eq, %arg1, %c0_i32 : i32
    %1 = arith.extui %0 : i1 to i32
    %c0_i32_0 = arith.constant 0 : i32
    %2 = arith.cmpi ne, %1, %c0_i32_0 : i32
    scf.if %2 {
      %c0_66 = arith.constant 0 : index
      %c0_67 = arith.constant 0 : index
      %216 = vector.load %arg6[%c0_66, %c0_67] : memref<8x32xf32, #tpu.memory_space<vmem>>, vector<8x32xf32>
      %c0_68 = arith.constant 0 : index
      %c0_69 = arith.constant 0 : index
      %217 = vector.load %arg9[%c0_68, %c0_69] : memref<8x32xf32, #tpu.memory_space<vmem>>, vector<8x32xf32>
      tpu.vector_store %arg9[%c0_68, %c0_69], %216 {strides = array<i32>} : memref<8x32xf32, #tpu.memory_space<vmem>>, vector<8x32xf32>,
      %c0_70 = arith.constant 0 : index
      %c0_71 = arith.constant 0 : index
      %218 = vector.load %arg7[%c0_70, %c0_71] : memref<8x32xf32, #tpu.memory_space<vmem>>, vector<8x32xf32>
      %c0_72 = arith.constant 0 : index
      %c0_73 = arith.constant 0 : index
      %219 = vector.load %arg10[%c0_72, %c0_73] : memref<8x32xf32, #tpu.memory_space<vmem>>, vector<8x32xf32>
      tpu.vector_store %arg10[%c0_72, %c0_73], %218 {strides = array<i32>} : memref<8x32xf32, #tpu.memory_space<vmem>>, vector<8x32xf32>,
    } else {
    }
    %c0 = arith.constant 0 : index
    %c0_1 = arith.constant 0 : index
    %c0_2 = arith.constant 0 : index
    %3 = vector.load %arg2[%c0, %c0_1, %c0_2] : memref<8x8x16xf32, #tpu.memory_space<vmem>>, vector<8x8x16xf32>
    %4 = vector.shape_cast %3 : vector<8x8x16xf32> to vector<64x16xf32>
    %c0_3 = arith.constant 0 : index
    %c0_4 = arith.constant 0 : index
    %5 = vector.load %arg3[%c0_3, %c0_4] : memref<16x128xf32, #tpu.memory_space<vmem>>, vector<16x128xf32>
    %cst = arith.constant dense<0.000000e+00> : vector<64x128xf32>
    %6 = tpu.matmul %4, %5, %cst {dimension_numbers = #tpu.dot_dimension_numbers<[1], [0], [0], [1], [0, 0, 1, 1], [], []>} : vector<64x16xf32>, vector<16x128xf32>, vector<64x128xf32> -> vector<64x128xf32>
    %c0_5 = arith.constant 0 : index
    %c0_6 = arith.constant 0 : index
    %7 = vector.load %arg5[%c0_5, %c0_6] : memref<1x128xf32, #tpu.memory_space<vmem>>, vector<1x128xf32>
    %8 = vector.broadcast %7 : vector<1x128xf32> to vector<64x128xf32>
    %9 = arith.addf %6, %8 : vector<64x128xf32>
    %10 = vector.shape_cast %9 : vector<64x128xf32> to vector<8x8x128xf32>
    %c0_7 = arith.constant 0 : index
    %c0_8 = arith.constant 0 : index
    %11 = vector.load %arg4[%c0_7, %c0_8] : memref<32x128xf32, #tpu.memory_space<vmem>>, vector<32x128xf32>
    %c0_9 = arith.constant 0 : index
    %c0_10 = arith.constant 0 : index
    %12 = vector.load %arg9[%c0_9, %c0_10] : memref<8x32xf32, #tpu.memory_space<vmem>>, vector<8x32xf32>
    %c0_11 = arith.constant 0 : index
    %c0_12 = arith.constant 0 : index
    %13 = vector.load %arg10[%c0_11, %c0_12] : memref<8x32xf32, #tpu.memory_space<vmem>>, vector<8x32xf32>
    %14 = vector.extract_strided_slice %10 {offsets = [0, 0, 0], sizes = [1, 8, 128], strides = [1, 1, 1]} : vector<8x8x128xf32> to vector<1x8x128xf32>
    %15 = vector.shape_cast %14 : vector<1x8x128xf32> to vector<8x128xf32>
    %cst_13 = arith.constant dense<0.000000e+00> : vector<8x128xf32>
    %16 = tpu.matmul %12, %11, %cst_13 {dimension_numbers = #tpu.dot_dimension_numbers<[1], [0], [0], [1], [0, 0, 1, 1], [], []>} : vector<8x32xf32>, vector<32x128xf32>, vector<8x128xf32> -> vector<8x128xf32>
    %17 = arith.addf %15, %16 : vector<8x128xf32>
    %18 = arith.negf %17 : vector<8x128xf32>
    %19 = math.exp %18 : vector<8x128xf32>
    %cst_14 = arith.constant 1.000000e+00 : f32
    %20 = vector.broadcast %cst_14 : f32 to vector<8x128xf32>
    %21 = arith.addf %20, %19 : vector<8x128xf32>
    %22 = arith.divf %20, %21 : vector<8x128xf32>
    %23 = vector.extract_strided_slice %22 {offsets = [0, 0], sizes = [8, 32], strides = [1, 1]} : vector<8x128xf32> to vector<8x32xf32>
    %24 = vector.extract_strided_slice %22 {offsets = [0, 32], sizes = [8, 32], strides = [1, 1]} : vector<8x128xf32> to vector<8x32xf32>
    %25 = vector.extract_strided_slice %22 {offsets = [0, 64], sizes = [8, 32], strides = [1, 1]} : vector<8x128xf32> to vector<8x32xf32>
    %26 = vector.extract_strided_slice %22 {offsets = [0, 96], sizes = [8, 32], strides = [1, 1]} : vector<8x128xf32> to vector<8x32xf32>
    %cst_15 = arith.constant 2.000000e+00 : f32
    %27 = vector.broadcast %cst_15 : f32 to vector<8x32xf32>
    %28 = arith.mulf %27, %26 : vector<8x32xf32>
    %cst_16 = arith.constant 1.000000e+00 : f32
    %29 = vector.broadcast %cst_16 : f32 to vector<8x32xf32>
    %30 = arith.subf %28, %29 : vector<8x32xf32>
    %31 = arith.mulf %24, %13 : vector<8x32xf32>
    %32 = arith.mulf %23, %30 : vector<8x32xf32>
    %33 = arith.addf %31, %32 : vector<8x32xf32>
    %34 = math.tanh %33 : vector<8x32xf32>
    %35 = arith.mulf %25, %34 : vector<8x32xf32>
    %c0_17 = arith.constant 0 : index
    %c0_18 = arith.constant 0 : index
    %c0_19 = arith.constant 0 : index
    %36 = vector.load %arg8[%c0_17, %c0_18, %c0_19] : memref<8x8x32xf32, #tpu.memory_space<vmem>>, vector<1x8x32xf32>
    %37 = vector.shape_cast %36 : vector<1x8x32xf32> to vector<8x32xf32>
    %38 = vector.shape_cast %35 : vector<8x32xf32> to vector<1x8x32xf32>
    tpu.vector_store %arg8[%c0_17, %c0_18, %c0_19], %38 {strides = array<i32>} : memref<8x8x32xf32, #tpu.memory_space<vmem>>, vector<1x8x32xf32>,
    %39 = vector.extract_strided_slice %10 {offsets = [1, 0, 0], sizes = [1, 8, 128], strides = [1, 1, 1]} : vector<8x8x128xf32> to vector<1x8x128xf32>
    %40 = vector.shape_cast %39 : vector<1x8x128xf32> to vector<8x128xf32>
    %cst_20 = arith.constant dense<0.000000e+00> : vector<8x128xf32>
    %41 = tpu.matmul %35, %11, %cst_20 {dimension_numbers = #tpu.dot_dimension_numbers<[1], [0], [0], [1], [0, 0, 1, 1], [], []>} : vector<8x32xf32>, vector<32x128xf32>, vector<8x128xf32> -> vector<8x128xf32>
    %42 = arith.addf %40, %41 : vector<8x128xf32>
    %43 = arith.negf %42 : vector<8x128xf32>
    %44 = math.exp %43 : vector<8x128xf32>
    %cst_21 = arith.constant 1.000000e+00 : f32
    %45 = vector.broadcast %cst_21 : f32 to vector<8x128xf32>
    %46 = arith.addf %45, %44 : vector<8x128xf32>
    %47 = arith.divf %45, %46 : vector<8x128xf32>
    %48 = vector.extract_strided_slice %47 {offsets = [0, 0], sizes = [8, 32], strides = [1, 1]} : vector<8x128xf32> to vector<8x32xf32>
    %49 = vector.extract_strided_slice %47 {offsets = [0, 32], sizes = [8, 32], strides = [1, 1]} : vector<8x128xf32> to vector<8x32xf32>
    %50 = vector.extract_strided_slice %47 {offsets = [0, 64], sizes = [8, 32], strides = [1, 1]} : vector<8x128xf32> to vector<8x32xf32>
    %51 = vector.extract_strided_slice %47 {offsets = [0, 96], sizes = [8, 32], strides = [1, 1]} : vector<8x128xf32> to vector<8x32xf32>
    %cst_22 = arith.constant 2.000000e+00 : f32
    %52 = vector.broadcast %cst_22 : f32 to vector<8x32xf32>
    %53 = arith.mulf %52, %51 : vector<8x32xf32>
    %cst_23 = arith.constant 1.000000e+00 : f32
    %54 = vector.broadcast %cst_23 : f32 to vector<8x32xf32>
    %55 = arith.subf %53, %54 : vector<8x32xf32>
    %56 = arith.mulf %49, %33 : vector<8x32xf32>
    %57 = arith.mulf %48, %55 : vector<8x32xf32>
    %58 = arith.addf %56, %57 : vector<8x32xf32>
    %59 = math.tanh %58 : vector<8x32xf32>
    %60 = arith.mulf %50, %59 : vector<8x32xf32>
    %c1 = arith.constant 1 : index
    %c0_24 = arith.constant 0 : index
    %c0_25 = arith.constant 0 : index
    %61 = vector.load %arg8[%c1, %c0_24, %c0_25] : memref<8x8x32xf32, #tpu.memory_space<vmem>>, vector<1x8x32xf32>
    %62 = vector.shape_cast %61 : vector<1x8x32xf32> to vector<8x32xf32>
    %63 = vector.shape_cast %60 : vector<8x32xf32> to vector<1x8x32xf32>
    tpu.vector_store %arg8[%c1, %c0_24, %c0_25], %63 {strides = array<i32>} : memref<8x8x32xf32, #tpu.memory_space<vmem>>, vector<1x8x32xf32>,
    %64 = vector.extract_strided_slice %10 {offsets = [2, 0, 0], sizes = [1, 8, 128], strides = [1, 1, 1]} : vector<8x8x128xf32> to vector<1x8x128xf32>
    %65 = vector.shape_cast %64 : vector<1x8x128xf32> to vector<8x128xf32>
    %cst_26 = arith.constant dense<0.000000e+00> : vector<8x128xf32>
    %66 = tpu.matmul %60, %11, %cst_26 {dimension_numbers = #tpu.dot_dimension_numbers<[1], [0], [0], [1], [0, 0, 1, 1], [], []>} : vector<8x32xf32>, vector<32x128xf32>, vector<8x128xf32> -> vector<8x128xf32>
    %67 = arith.addf %65, %66 : vector<8x128xf32>
    %68 = arith.negf %67 : vector<8x128xf32>
    %69 = math.exp %68 : vector<8x128xf32>
    %cst_27 = arith.constant 1.000000e+00 : f32
    %70 = vector.broadcast %cst_27 : f32 to vector<8x128xf32>
    %71 = arith.addf %70, %69 : vector<8x128xf32>
    %72 = arith.divf %70, %71 : vector<8x128xf32>
    %73 = vector.extract_strided_slice %72 {offsets = [0, 0], sizes = [8, 32], strides = [1, 1]} : vector<8x128xf32> to vector<8x32xf32>
    %74 = vector.extract_strided_slice %72 {offsets = [0, 32], sizes = [8, 32], strides = [1, 1]} : vector<8x128xf32> to vector<8x32xf32>
    %75 = vector.extract_strided_slice %72 {offsets = [0, 64], sizes = [8, 32], strides = [1, 1]} : vector<8x128xf32> to vector<8x32xf32>
    %76 = vector.extract_strided_slice %72 {offsets = [0, 96], sizes = [8, 32], strides = [1, 1]} : vector<8x128xf32> to vector<8x32xf32>
    %cst_28 = arith.constant 2.000000e+00 : f32
    %77 = vector.broadcast %cst_28 : f32 to vector<8x32xf32>
    %78 = arith.mulf %77, %76 : vector<8x32xf32>
    %cst_29 = arith.constant 1.000000e+00 : f32
    %79 = vector.broadcast %cst_29 : f32 to vector<8x32xf32>
    %80 = arith.subf %78, %79 : vector<8x32xf32>
    %81 = arith.mulf %74, %58 : vector<8x32xf32>
    %82 = arith.mulf %73, %80 : vector<8x32xf32>
    %83 = arith.addf %81, %82 : vector<8x32xf32>
    %84 = math.tanh %83 : vector<8x32xf32>
    %85 = arith.mulf %75, %84 : vector<8x32xf32>
    %c2 = arith.constant 2 : index
    %c0_30 = arith.constant 0 : index
    %c0_31 = arith.constant 0 : index
    %86 = vector.load %arg8[%c2, %c0_30, %c0_31] : memref<8x8x32xf32, #tpu.memory_space<vmem>>, vector<1x8x32xf32>
    %87 = vector.shape_cast %86 : vector<1x8x32xf32> to vector<8x32xf32>
    %88 = vector.shape_cast %85 : vector<8x32xf32> to vector<1x8x32xf32>
    tpu.vector_store %arg8[%c2, %c0_30, %c0_31], %88 {strides = array<i32>} : memref<8x8x32xf32, #tpu.memory_space<vmem>>, vector<1x8x32xf32>,
    %89 = vector.extract_strided_slice %10 {offsets = [3, 0, 0], sizes = [1, 8, 128], strides = [1, 1, 1]} : vector<8x8x128xf32> to vector<1x8x128xf32>
    %90 = vector.shape_cast %89 : vector<1x8x128xf32> to vector<8x128xf32>
    %cst_32 = arith.constant dense<0.000000e+00> : vector<8x128xf32>
    %91 = tpu.matmul %85, %11, %cst_32 {dimension_numbers = #tpu.dot_dimension_numbers<[1], [0], [0], [1], [0, 0, 1, 1], [], []>} : vector<8x32xf32>, vector<32x128xf32>, vector<8x128xf32> -> vector<8x128xf32>
    %92 = arith.addf %90, %91 : vector<8x128xf32>
    %93 = arith.negf %92 : vector<8x128xf32>
    %94 = math.exp %93 : vector<8x128xf32>
    %cst_33 = arith.constant 1.000000e+00 : f32
    %95 = vector.broadcast %cst_33 : f32 to vector<8x128xf32>
    %96 = arith.addf %95, %94 : vector<8x128xf32>
    %97 = arith.divf %95, %96 : vector<8x128xf32>
    %98 = vector.extract_strided_slice %97 {offsets = [0, 0], sizes = [8, 32], strides = [1, 1]} : vector<8x128xf32> to vector<8x32xf32>
    %99 = vector.extract_strided_slice %97 {offsets = [0, 32], sizes = [8, 32], strides = [1, 1]} : vector<8x128xf32> to vector<8x32xf32>
    %100 = vector.extract_strided_slice %97 {offsets = [0, 64], sizes = [8, 32], strides = [1, 1]} : vector<8x128xf32> to vector<8x32xf32>
    %101 = vector.extract_strided_slice %97 {offsets = [0, 96], sizes = [8, 32], strides = [1, 1]} : vector<8x128xf32> to vector<8x32xf32>
    %cst_34 = arith.constant 2.000000e+00 : f32
    %102 = vector.broadcast %cst_34 : f32 to vector<8x32xf32>
    %103 = arith.mulf %102, %101 : vector<8x32xf32>
    %cst_35 = arith.constant 1.000000e+00 : f32
    %104 = vector.broadcast %cst_35 : f32 to vector<8x32xf32>
    %105 = arith.subf %103, %104 : vector<8x32xf32>
    %106 = arith.mulf %99, %83 : vector<8x32xf32>
    %107 = arith.mulf %98, %105 : vector<8x32xf32>
    %108 = arith.addf %106, %107 : vector<8x32xf32>
    %109 = math.tanh %108 : vector<8x32xf32>
    %110 = arith.mulf %100, %109 : vector<8x32xf32>
    %c3 = arith.constant 3 : index
    %c0_36 = arith.constant 0 : index
    %c0_37 = arith.constant 0 : index
    %111 = vector.load %arg8[%c3, %c0_36, %c0_37] : memref<8x8x32xf32, #tpu.memory_space<vmem>>, vector<1x8x32xf32>
    %112 = vector.shape_cast %111 : vector<1x8x32xf32> to vector<8x32xf32>
    %113 = vector.shape_cast %110 : vector<8x32xf32> to vector<1x8x32xf32>
    tpu.vector_store %arg8[%c3, %c0_36, %c0_37], %113 {strides = array<i32>} : memref<8x8x32xf32, #tpu.memory_space<vmem>>, vector<1x8x32xf32>,
    %114 = vector.extract_strided_slice %10 {offsets = [4, 0, 0], sizes = [1, 8, 128], strides = [1, 1, 1]} : vector<8x8x128xf32> to vector<1x8x128xf32>
    %115 = vector.shape_cast %114 : vector<1x8x128xf32> to vector<8x128xf32>
    %cst_38 = arith.constant dense<0.000000e+00> : vector<8x128xf32>
    %116 = tpu.matmul %110, %11, %cst_38 {dimension_numbers = #tpu.dot_dimension_numbers<[1], [0], [0], [1], [0, 0, 1, 1], [], []>} : vector<8x32xf32>, vector<32x128xf32>, vector<8x128xf32> -> vector<8x128xf32>
    %117 = arith.addf %115, %116 : vector<8x128xf32>
    %118 = arith.negf %117 : vector<8x128xf32>
    %119 = math.exp %118 : vector<8x128xf32>
    %cst_39 = arith.constant 1.000000e+00 : f32
    %120 = vector.broadcast %cst_39 : f32 to vector<8x128xf32>
    %121 = arith.addf %120, %119 : vector<8x128xf32>
    %122 = arith.divf %120, %121 : vector<8x128xf32>
    %123 = vector.extract_strided_slice %122 {offsets = [0, 0], sizes = [8, 32], strides = [1, 1]} : vector<8x128xf32> to vector<8x32xf32>
    %124 = vector.extract_strided_slice %122 {offsets = [0, 32], sizes = [8, 32], strides = [1, 1]} : vector<8x128xf32> to vector<8x32xf32>
    %125 = vector.extract_strided_slice %122 {offsets = [0, 64], sizes = [8, 32], strides = [1, 1]} : vector<8x128xf32> to vector<8x32xf32>
    %126 = vector.extract_strided_slice %122 {offsets = [0, 96], sizes = [8, 32], strides = [1, 1]} : vector<8x128xf32> to vector<8x32xf32>
    %cst_40 = arith.constant 2.000000e+00 : f32
    %127 = vector.broadcast %cst_40 : f32 to vector<8x32xf32>
    %128 = arith.mulf %127, %126 : vector<8x32xf32>
    %cst_41 = arith.constant 1.000000e+00 : f32
    %129 = vector.broadcast %cst_41 : f32 to vector<8x32xf32>
    %130 = arith.subf %128, %129 : vector<8x32xf32>
    %131 = arith.mulf %124, %108 : vector<8x32xf32>
    %132 = arith.mulf %123, %130 : vector<8x32xf32>
    %133 = arith.addf %131, %132 : vector<8x32xf32>
    %134 = math.tanh %133 : vector<8x32xf32>
    %135 = arith.mulf %125, %134 : vector<8x32xf32>
    %c4 = arith.constant 4 : index
    %c0_42 = arith.constant 0 : index
    %c0_43 = arith.constant 0 : index
    %136 = vector.load %arg8[%c4, %c0_42, %c0_43] : memref<8x8x32xf32, #tpu.memory_space<vmem>>, vector<1x8x32xf32>
    %137 = vector.shape_cast %136 : vector<1x8x32xf32> to vector<8x32xf32>
    %138 = vector.shape_cast %135 : vector<8x32xf32> to vector<1x8x32xf32>
    tpu.vector_store %arg8[%c4, %c0_42, %c0_43], %138 {strides = array<i32>} : memref<8x8x32xf32, #tpu.memory_space<vmem>>, vector<1x8x32xf32>,
    %139 = vector.extract_strided_slice %10 {offsets = [5, 0, 0], sizes = [1, 8, 128], strides = [1, 1, 1]} : vector<8x8x128xf32> to vector<1x8x128xf32>
    %140 = vector.shape_cast %139 : vector<1x8x128xf32> to vector<8x128xf32>
    %cst_44 = arith.constant dense<0.000000e+00> : vector<8x128xf32>
    %141 = tpu.matmul %135, %11, %cst_44 {dimension_numbers = #tpu.dot_dimension_numbers<[1], [0], [0], [1], [0, 0, 1, 1], [], []>} : vector<8x32xf32>, vector<32x128xf32>, vector<8x128xf32> -> vector<8x128xf32>
    %142 = arith.addf %140, %141 : vector<8x128xf32>
    %143 = arith.negf %142 : vector<8x128xf32>
    %144 = math.exp %143 : vector<8x128xf32>
    %cst_45 = arith.constant 1.000000e+00 : f32
    %145 = vector.broadcast %cst_45 : f32 to vector<8x128xf32>
    %146 = arith.addf %145, %144 : vector<8x128xf32>
    %147 = arith.divf %145, %146 : vector<8x128xf32>
    %148 = vector.extract_strided_slice %147 {offsets = [0, 0], sizes = [8, 32], strides = [1, 1]} : vector<8x128xf32> to vector<8x32xf32>
    %149 = vector.extract_strided_slice %147 {offsets = [0, 32], sizes = [8, 32], strides = [1, 1]} : vector<8x128xf32> to vector<8x32xf32>
    %150 = vector.extract_strided_slice %147 {offsets = [0, 64], sizes = [8, 32], strides = [1, 1]} : vector<8x128xf32> to vector<8x32xf32>
    %151 = vector.extract_strided_slice %147 {offsets = [0, 96], sizes = [8, 32], strides = [1, 1]} : vector<8x128xf32> to vector<8x32xf32>
    %cst_46 = arith.constant 2.000000e+00 : f32
    %152 = vector.broadcast %cst_46 : f32 to vector<8x32xf32>
    %153 = arith.mulf %152, %151 : vector<8x32xf32>
    %cst_47 = arith.constant 1.000000e+00 : f32
    %154 = vector.broadcast %cst_47 : f32 to vector<8x32xf32>
    %155 = arith.subf %153, %154 : vector<8x32xf32>
    %156 = arith.mulf %149, %133 : vector<8x32xf32>
    %157 = arith.mulf %148, %155 : vector<8x32xf32>
    %158 = arith.addf %156, %157 : vector<8x32xf32>
    %159 = math.tanh %158 : vector<8x32xf32>
    %160 = arith.mulf %150, %159 : vector<8x32xf32>
    %c5 = arith.constant 5 : index
    %c0_48 = arith.constant 0 : index
    %c0_49 = arith.constant 0 : index
    %161 = vector.load %arg8[%c5, %c0_48, %c0_49] : memref<8x8x32xf32, #tpu.memory_space<vmem>>, vector<1x8x32xf32>
    %162 = vector.shape_cast %161 : vector<1x8x32xf32> to vector<8x32xf32>
    %163 = vector.shape_cast %160 : vector<8x32xf32> to vector<1x8x32xf32>
    tpu.vector_store %arg8[%c5, %c0_48, %c0_49], %163 {strides = array<i32>} : memref<8x8x32xf32, #tpu.memory_space<vmem>>, vector<1x8x32xf32>,
    %164 = vector.extract_strided_slice %10 {offsets = [6, 0, 0], sizes = [1, 8, 128], strides = [1, 1, 1]} : vector<8x8x128xf32> to vector<1x8x128xf32>
    %165 = vector.shape_cast %164 : vector<1x8x128xf32> to vector<8x128xf32>
    %cst_50 = arith.constant dense<0.000000e+00> : vector<8x128xf32>
    %166 = tpu.matmul %160, %11, %cst_50 {dimension_numbers = #tpu.dot_dimension_numbers<[1], [0], [0], [1], [0, 0, 1, 1], [], []>} : vector<8x32xf32>, vector<32x128xf32>, vector<8x128xf32> -> vector<8x128xf32>
    %167 = arith.addf %165, %166 : vector<8x128xf32>
    %168 = arith.negf %167 : vector<8x128xf32>
    %169 = math.exp %168 : vector<8x128xf32>
    %cst_51 = arith.constant 1.000000e+00 : f32
    %170 = vector.broadcast %cst_51 : f32 to vector<8x128xf32>
    %171 = arith.addf %170, %169 : vector<8x128xf32>
    %172 = arith.divf %170, %171 : vector<8x128xf32>
    %173 = vector.extract_strided_slice %172 {offsets = [0, 0], sizes = [8, 32], strides = [1, 1]} : vector<8x128xf32> to vector<8x32xf32>
    %174 = vector.extract_strided_slice %172 {offsets = [0, 32], sizes = [8, 32], strides = [1, 1]} : vector<8x128xf32> to vector<8x32xf32>
    %175 = vector.extract_strided_slice %172 {offsets = [0, 64], sizes = [8, 32], strides = [1, 1]} : vector<8x128xf32> to vector<8x32xf32>
    %176 = vector.extract_strided_slice %172 {offsets = [0, 96], sizes = [8, 32], strides = [1, 1]} : vector<8x128xf32> to vector<8x32xf32>
    %cst_52 = arith.constant 2.000000e+00 : f32
    %177 = vector.broadcast %cst_52 : f32 to vector<8x32xf32>
    %178 = arith.mulf %177, %176 : vector<8x32xf32>
    %cst_53 = arith.constant 1.000000e+00 : f32
    %179 = vector.broadcast %cst_53 : f32 to vector<8x32xf32>
    %180 = arith.subf %178, %179 : vector<8x32xf32>
    %181 = arith.mulf %174, %158 : vector<8x32xf32>
    %182 = arith.mulf %173, %180 : vector<8x32xf32>
    %183 = arith.addf %181, %182 : vector<8x32xf32>
    %184 = math.tanh %183 : vector<8x32xf32>
    %185 = arith.mulf %175, %184 : vector<8x32xf32>
    %c6 = arith.constant 6 : index
    %c0_54 = arith.constant 0 : index
    %c0_55 = arith.constant 0 : index
    %186 = vector.load %arg8[%c6, %c0_54, %c0_55] : memref<8x8x32xf32, #tpu.memory_space<vmem>>, vector<1x8x32xf32>
    %187 = vector.shape_cast %186 : vector<1x8x32xf32> to vector<8x32xf32>
    %188 = vector.shape_cast %185 : vector<8x32xf32> to vector<1x8x32xf32>
    tpu.vector_store %arg8[%c6, %c0_54, %c0_55], %188 {strides = array<i32>} : memref<8x8x32xf32, #tpu.memory_space<vmem>>, vector<1x8x32xf32>,
    %189 = vector.extract_strided_slice %10 {offsets = [7, 0, 0], sizes = [1, 8, 128], strides = [1, 1, 1]} : vector<8x8x128xf32> to vector<1x8x128xf32>
    %190 = vector.shape_cast %189 : vector<1x8x128xf32> to vector<8x128xf32>
    %cst_56 = arith.constant dense<0.000000e+00> : vector<8x128xf32>
    %191 = tpu.matmul %185, %11, %cst_56 {dimension_numbers = #tpu.dot_dimension_numbers<[1], [0], [0], [1], [0, 0, 1, 1], [], []>} : vector<8x32xf32>, vector<32x128xf32>, vector<8x128xf32> -> vector<8x128xf32>
    %192 = arith.addf %190, %191 : vector<8x128xf32>
    %193 = arith.negf %192 : vector<8x128xf32>
    %194 = math.exp %193 : vector<8x128xf32>
    %cst_57 = arith.constant 1.000000e+00 : f32
    %195 = vector.broadcast %cst_57 : f32 to vector<8x128xf32>
    %196 = arith.addf %195, %194 : vector<8x128xf32>
    %197 = arith.divf %195, %196 : vector<8x128xf32>
    %198 = vector.extract_strided_slice %197 {offsets = [0, 0], sizes = [8, 32], strides = [1, 1]} : vector<8x128xf32> to vector<8x32xf32>
    %199 = vector.extract_strided_slice %197 {offsets = [0, 32], sizes = [8, 32], strides = [1, 1]} : vector<8x128xf32> to vector<8x32xf32>
    %200 = vector.extract_strided_slice %197 {offsets = [0, 64], sizes = [8, 32], strides = [1, 1]} : vector<8x128xf32> to vector<8x32xf32>
    %201 = vector.extract_strided_slice %197 {offsets = [0, 96], sizes = [8, 32], strides = [1, 1]} : vector<8x128xf32> to vector<8x32xf32>
    %cst_58 = arith.constant 2.000000e+00 : f32
    %202 = vector.broadcast %cst_58 : f32 to vector<8x32xf32>
    %203 = arith.mulf %202, %201 : vector<8x32xf32>
    %cst_59 = arith.constant 1.000000e+00 : f32
    %204 = vector.broadcast %cst_59 : f32 to vector<8x32xf32>
    %205 = arith.subf %203, %204 : vector<8x32xf32>
    %206 = arith.mulf %199, %183 : vector<8x32xf32>
    %207 = arith.mulf %198, %205 : vector<8x32xf32>
    %208 = arith.addf %206, %207 : vector<8x32xf32>
    %209 = math.tanh %208 : vector<8x32xf32>
    %210 = arith.mulf %200, %209 : vector<8x32xf32>
    %c7 = arith.constant 7 : index
    %c0_60 = arith.constant 0 : index
    %c0_61 = arith.constant 0 : index
    %211 = vector.load %arg8[%c7, %c0_60, %c0_61] : memref<8x8x32xf32, #tpu.memory_space<vmem>>, vector<1x8x32xf32>
    %212 = vector.shape_cast %211 : vector<1x8x32xf32> to vector<8x32xf32>
    %213 = vector.shape_cast %210 : vector<8x32xf32> to vector<1x8x32xf32>
    tpu.vector_store %arg8[%c7, %c0_60, %c0_61], %213 {strides = array<i32>} : memref<8x8x32xf32, #tpu.memory_space<vmem>>, vector<1x8x32xf32>,
    %c0_62 = arith.constant 0 : index
    %c0_63 = arith.constant 0 : index
    %214 = vector.load %arg9[%c0_62, %c0_63] : memref<8x32xf32, #tpu.memory_space<vmem>>, vector<8x32xf32>
    tpu.vector_store %arg9[%c0_62, %c0_63], %210 {strides = array<i32>} : memref<8x32xf32, #tpu.memory_space<vmem>>, vector<8x32xf32>,
    %c0_64 = arith.constant 0 : index
    %c0_65 = arith.constant 0 : index
    %215 = vector.load %arg10[%c0_64, %c0_65] : memref<8x32xf32, #tpu.memory_space<vmem>>, vector<8x32xf32>
    tpu.vector_store %arg10[%c0_64, %c0_65], %208 {strides = array<i32>} : memref<8x32xf32, #tpu.memory_space<vmem>>, vector<8x32xf32>,
    return
  }
  func.func @transform_0(%arg0: i32, %arg1: i32) -> (i32, i32, i32) {
    %c0_i32 = arith.constant 0 : i32
    %c0_i32_0 = arith.constant 0 : i32
    return %arg1, %arg0, %c0_i32 : i32, i32, i32
  }
  func.func @transform_1(%arg0: i32, %arg1: i32) -> (i32, i32) {
    %c0_i32 = arith.constant 0 : i32
    %c0_i32_0 = arith.constant 0 : i32
    %c0_i32_1 = arith.constant 0 : i32
    return %c0_i32, %c0_i32_0 : i32, i32
  }
  func.func @transform_2(%arg0: i32, %arg1: i32) -> (i32, i32) {
    %c0_i32 = arith.constant 0 : i32
    %c0_i32_0 = arith.constant 0 : i32
    %c0_i32_1 = arith.constant 0 : i32
    return %c0_i32, %c0_i32_0 : i32, i32
  }
  func.func @transform_3(%arg0: i32, %arg1: i32) -> (i32, i32) {
    %c0_i32 = arith.constant 0 : i32
    %c0_i32_0 = arith.constant 0 : i32
    %c0_i32_1 = arith.constant 0 : i32
    return %c0_i32, %c0_i32_0 : i32, i32
  }
  func.func @transform_4(%arg0: i32, %arg1: i32) -> (i32, i32) {
    %c0_i32 = arith.constant 0 : i32
    %c0_i32_0 = arith.constant 0 : i32
    return %arg0, %c0_i32 : i32, i32
  }
  func.func @transform_5(%arg0: i32, %arg1: i32) -> (i32, i32) {
    %c0_i32 = arith.constant 0 : i32
    %c0_i32_0 = arith.constant 0 : i32
    return %arg0, %c0_i32 : i32, i32
  }
  func.func @transform_6(%arg0: i32, %arg1: i32) -> (i32, i32, i32) {
    %c0_i32 = arith.constant 0 : i32
    %c0_i32_0 = arith.constant 0 : i32
    return %arg1, %arg0, %c0_i32 : i32, i32, i32
  }
  func.func @transform_7(%arg0: i32, %arg1: i32) -> (i32, i32) {
    %c0_i32 = arith.constant 0 : i32
    %c0_i32_0 = arith.constant 0 : i32
    return %arg0, %c0_i32 : i32, i32
  }
  func.func @transform_8(%arg0: i32, %arg1: i32) -> (i32, i32) {
    %c0_i32 = arith.constant 0 : i32
    %c0_i32_0 = arith.constant 0 : i32
    return %arg0, %c0_i32 : i32, i32
  }
}

</mosaic_0001>

<bundles_post_ra>
// kernel: tpu_custom_call.1
= control target key start
LH: loop header
LB: loop body
LE: loop exit
PB: predicated region body
PF: predicated region fallthrough
CT: control target
= control target key end

     0   :  { %14 = vsyncpa [#allocation3], 0  ;;  %s1868_s0 = inlined_call_operand.hbm [shape: f32[8,8,16], index: 0, kind: input, shape index: {}]   ;;  %s1869_s1 = inlined_call_operand.hbm [shape: f32[16,128], index: 1, kind: input, shape index: {}]   ;;  %s1870_s2 = inlined_call_operand.hbm [shape: f32[32,128], index: 2, kind: input, shape index: {}]   ;;  %s1871_s3 = inlined_call_operand.vmem [shape: f32[1,128], index: 3, kind: input, shape index: {}]   ;;  %s1872_s4 = inlined_call_operand.vmem [shape: f32[8,32], index: 4, kind: input, shape index: {}]   ;;  %s1873_s5 = inlined_call_operand.vmem [shape: f32[8,32], index: 5, kind: input, shape index: {}]   ;;  %s1874_s6 = inlined_call_operand.hbm [shape: f32[8,8,32], index: 6, kind: output, shape index: {0}]   ;;  %s1875_s7 = inlined_call_operand.hbm [shape: f32[8,32], index: 7, kind: output, shape index: {1}]   ;;  %s1876_s8 = inlined_call_operand.hbm [shape: f32[8,32], index: 8, kind: output, shape index: {2}]  }
   0x1   :  { %15 = vsyncpa [#allocation6], 0 }
   0x2   :  { %16 = vsyncpa [#allocation4], 0 }
   0x3   :  { %17 = vsyncpa [#allocation10], 0  ;;  %s1560_s27 = smov [#allocation5]   ;;  %s1561_s29 = smov [#allocation2]  }
   0x4   :  { %s35_s28 = sshll.u32 %s1560_s27, 4  ;;  %s23_s30 = sshll.u32 %s1561_s29, 4  ;;  %s36_s28 = int_to_ptr.vmem [resolvable:$true] %s35_s28  ;;  %s1619_s30 = int_to_ptr.vmem [resolvable:$true] %s23_s30 }
   0x5   :  { %s1420_s11 = scalar_lea.hbm %s1869_s1, 256 }
   0x6   :  { %p1421_p0 = scmp.ne.s32.totalorder %s1869_s1, %s1420_s11  ;;  %p1424_p1 = scmp.lt.u32.totalorder %s1420_s11, %s1869_s1 }
   0x8   :  { %p1426_p2 = pnand %p1424_p1, %p1421_p0 }
   0xa   :  { %1429 = shalt.err (!%p1426_p2)
}
   0xb   :  { %s1430_s16 = scalar_lea.vmem %s36_s28, 256  ;;  %p1435_p4 = scmp.lt.s32.totalorder %s36_s28, %s36_s28 }
   0xc   :  { %p1431_p3 = scmp.ne.s32.totalorder %s36_s28, %s1430_s16  ;;  %p1436_p5 = scmp.lt.s32.totalorder %s1430_s16, %s1430_s16 }
   0xe   :  { %p1437_p6 = por %p1436_p5, %p1435_p4 }
  0x10   :  { %p1438_p7 = pnand %p1437_p6, %p1431_p3 }
  0x12   :  { %1441 = shalt.err (!%p1438_p7)
}
  0x13   :  { %s1562_s17 = smov 128   ;;  %s1563_s18 = smov 8  }
  0x14   :  { %41 = dma.hbm_to_vmem [thread:$0]  %s1869_s1, 256, %s36_s28, [#allocation6], %s1562_s17, %s1562_s17, %s1563_s18  }
  0x15   :  { %s1442_s23 = scalar_lea.hbm %s1868_s0, 1024 }
  0x16   :  { %p1443_p8 = scmp.ne.s32.totalorder %s1868_s0, %s1442_s23  ;;  %p1446_p9 = scmp.lt.u32.totalorder %s1442_s23, %s1868_s0 }
  0x18   :  { %p1448_p10 = pnand %p1446_p9, %p1443_p8 }
  0x1a   :  { %1451 = shalt.err (!%p1448_p10)
}
  0x1b   :  { %s1452_s29 = scalar_lea.vmem %s1619_s30, 1024  ;;  %p1457_p12 = scmp.lt.s32.totalorder %s1619_s30, %s1619_s30 }
  0x1c   :  { %p1453_p11 = scmp.ne.s32.totalorder %s1619_s30, %s1452_s29  ;;  %p1458_p13 = scmp.lt.s32.totalorder %s1452_s29, %s1452_s29 }
  0x1e   :  { %p1459_p0 = por %p1458_p13, %p1457_p12 }
  0x20   :  { %p1460_p1 = pnand %p1459_p0, %p1453_p11 }
  0x22   :  { %1463 = shalt.err (!%p1460_p1)
}
  0x23   :  { %29 = dma.hbm_to_vmem [thread:$0]  %s1868_s0, 1024, %s1619_s30, [#allocation3], %s1562_s17, %s1562_s17, %s1563_s18  }
  0x24   :  { %s1564_s9 = smov [#allocation7]   ;;  %s1464_s13 = scalar_lea.hbm %s1870_s2, 512 }
  0x25   :  { %s47_s10 = sshll.u32 %s1564_s9, 4  ;;  %p1465_p2 = scmp.ne.s32.totalorder %s1870_s2, %s1464_s13  ;;  %s48_s10 = int_to_ptr.vmem [resolvable:$true] %s47_s10 }
  0x26   :  { %p1468_p3 = scmp.lt.u32.totalorder %s1464_s13, %s1870_s2 }
  0x28   :  { %p1470_p4 = pnand %p1468_p3, %p1465_p2 }
  0x2a   :  { %1473 = shalt.err (!%p1470_p4)
}
  0x2b   :  { %s1474_s20 = scalar_lea.vmem %s48_s10, 512  ;;  %p1479_p6 = scmp.lt.s32.totalorder %s48_s10, %s48_s10 }
  0x2c   :  { %p1475_p5 = scmp.ne.s32.totalorder %s48_s10, %s1474_s20  ;;  %p1480_p7 = scmp.lt.s32.totalorder %s1474_s20, %s1474_s20 }
  0x2e   :  { %p1481_p8 = por %p1480_p7, %p1479_p6 }
  0x30   :  { %p1482_p9 = pnand %p1481_p8, %p1475_p5 }
  0x32   :  { %1485 = shalt.err (!%p1482_p9)
}
  0x33   :  { %53 = dma.hbm_to_vmem [thread:$0]  %s1870_s2, 512, %s48_s10, [#allocation6], %s1562_s17, %s1562_s17, %s1563_s18  }
  0x34   :  { %1552 = dma.done.wait [#allocation3], 1024  }
  0x35   :  { %1553 = vsyncadd [#allocation3], 4294966272 }
  0x36   :  { %1554 = dma.done.wait [#allocation6], 768  }
  0x37   :  { %1555 = vsyncadd [#allocation6], 4294966528  ;;  %v1565_v0 = vmov 0.0|0.0   ;;  %vm1566_vm0 = vmmov 0   ;;  %v1567_v1 = vmov 0.0   ;;  %vm95_vm1 = vcmask 130048  }
  0x38   :  { %1310 = vmatprep.subr.bf16.mxu1 %v1565_v0  ;;  %1226 = vmatprep.mubr.msk.f32.mxu1 %vm1566_vm0, %v1567_v1  ;;  %v86_v2 = vld [vmem:[#allocation5] sm:$0xff]  ;;  %v87_v3 = vld [vmem:[#allocation5 + $0x8] sm:$0xff]  ;;  %v225_v4 = vld [vmem:[#allocation7] sm:$0xff]  ;;  %vm74_vm2 = vcmask 261120   ;;  %s1570_s25 = smov 96   ;;  %s1571_s26 = smov [#allocation9]  }
  0x39   :  { %v1306_v5 = vpack.c.bf16 %v87_v3, %v86_v2  ;;  %v226_v6 = vld [vmem:[#allocation7 + $0x8] sm:$0xff]  ;;  %v78_v7 = vld [vmem:[#allocation2] sm:$0xff]  ;;  %v228_v10 = vld [vmem:[#allocation7 + $0x18] sm:$0xff]  ;;  %s1092_s27 = sshll.u32 %s1571_s26, 4  ;;  %s1572_s29 = smov [#allocation8]   ;;  %s1093_s27 = int_to_ptr.vmem [resolvable:$true] %s1092_s27 }
  0x3a   :  { %v1674_v8 = vpack.c.bf16 %v226_v6, %v225_v4  ;;  %1206 = vmatprep.mubr.msk.f32.mxu0 %vm95_vm1, %v78_v7  ;;  %v227_v9 = vld [vmem:[#allocation7 + $0x10] sm:$0xff]  ;;  %v79_v12 = vld [vmem:[#allocation2 + $0x8] sm:$0xff]  ;;  %v80_v55 = vld [vmem:[#allocation2 + $0x10] sm:$0xff]  ;;  %s1079_s1 = sshll.u32 %s1572_s29, 4  ;;  %s1573_s28 = smov [#allocation11]   ;;  %s1813_s1 = int_to_ptr.vmem [resolvable:$true] %s1079_s1 }
  0x3b   :  { %v73_v11 = vld [vmem:[%s1872_s4] sm:$0xff]  ;;  %1307 = vmatprep.subr.bf16.mxu0 %v1306_v5  ;;  %v1682_v13 = vpack.c.bf16 %v228_v10, %v227_v9  ;;  %v81_v56 = vld [vmem:[#allocation2 + $0x18] sm:$0xff]  ;;  %v83_v58 = vld [vmem:[#allocation2 + $0x28] sm:$0xff]  ;;  %s1102_s9 = sshll.u32 %s1573_s28, 4  ;;  %s1486_s10 = scalar_lea.vmem %s1093_s27, 128  ;;  %s1817_s9 = int_to_ptr.vmem [resolvable:$true] %s1102_s9 }
  0x3c   :  { %75 = vst.msk [vmem:[#allocation9] sm:$0xff] %vm74_vm2, %v73_v11  ;;  %1312 = vmatpush3.bf16.msra.mxu1 %v1674_v8  ;;  %1309 = vmatpush3.bf16.msra.mxu0 %v1306_v5  ;;  %v76_v15 = vld [vmem:[%s1873_s5] sm:$0xff]  ;;  %s1568_s5 = smov 32   ;;  %v84_v59 = vld [vmem:[#allocation2 + $0x30] sm:$0xff]  ;;  %v85_v60 = vld [vmem:[#allocation2 + $0x38] sm:$0xff]  ;;  %p1487_p10 = scmp.ne.s32.totalorder %s1093_s27, %s1486_s10 }
  0x3d   :  { %1313 = vmatprep.subr.bf16.mxu1 %v1565_v0  ;;  %1322 = vmatprep.subr.bf16.mxu0 %v1565_v0  ;;  %77 = vst.msk [vmem:[#allocation11] sm:$0xff] %vm74_vm2, %v76_v15  ;;  %v1707_v16 = vld [vmem:[%s1871_s3] ss:$0 sm:$0xff]  ;;  %s1569_s3 = smov 64   ;;  %p1491_p11 = scmp.lt.s32.totalorder %s1093_s27, %s1093_s27 }
  0x3e   :  { %v82_v57 = vld [vmem:[#allocation2 + $0x20] sm:$0xff]  ;;  %p1492_p12 = scmp.lt.s32.totalorder %s1486_s10, %s1486_s10 }
  0x3f   :  { %1207 = vmatmul.mubr.msk.f32.vlgmr.msra.gmra.mrb[0].mxu0 %vm95_vm1, %v79_v12 }
  0x40   :  { %1315 = vmatpush3.bf16.msra.mxu1 %v1682_v13  ;;  %1324 = vmatpush3.bf16.msra.mxu0 %v1674_v8  ;;  %p1493_p13 = por %p1492_p12, %p1491_p11 }
  0x41   :  { %1316 = vmatprep.subr.bf16.mxu1 %v1565_v0  ;;  %1325 = vmatprep.subr.bf16.mxu0 %v1565_v0 }
  0x42   :  { %1209 = vmatprep.mubr.msk.f32.mxu0 %vm95_vm1, %v80_v55  ;;  %p1494_p0 = pnand %p1493_p13, %p1487_p10 }
  0x43   :  { %v229_v14 = vld [vmem:[#allocation9] sm:$0xff]  ;;  %1210 = vmatmul.mubr.msk.f32.gmra.mrb[2].mxu0 %vm95_vm1, %v81_v56 }
  0x44   :  { %1227 = vmatmul.mubr.msk.f32.vlgmr.msra.gmra.mrb[0].mxu1 %vm74_vm2, %v229_v14  ;;  %1327 = vmatpush3.bf16.msra.mxu0 %v1682_v13  ;;  %v230_v29 = vld [vmem:[#allocation11] sm:$0xff] }
  0x45   :  { %1318 = vmatpush3.bf16.msra.mxu1 %v1674_v8  ;;  %1237 = vmatprep.mubr.msk.f32.mxu1 %vm1566_vm0, %v1567_v1 }
  0x46   :  { %1319 = vmatprep.subr.bf16.mxu1 %v1565_v0  ;;  %1334 = vmatprep.subr.bf16.mxu0 %v1565_v0 }
  0x47   :  { %1212 = vmatprep.mubr.msk.f32.mxu0 %vm95_vm1, %v82_v57 }
  0x48   :  { %1213 = vmatmul.mubr.msk.f32.gmra.mrb[4].mxu0 %vm95_vm1, %v83_v58 }
  0x49   :  { %1321 = vmatpush3.bf16.msra.mxu1 %v1682_v13  ;;  %1215 = vmatprep.mubr.msk.f32.mxu0 %vm95_vm1, %v84_v59 }
  0x4a   :  { %1328 = vmatprep.subr.bf16.mxu1 %v1565_v0 }
  0x4c   :  { %1216 = vmatmul.mubr.msk.f32.gmra.mrb[6].mxu0 %vm95_vm1, %v85_v60 }
  0x4d   :  { %1248 = vmatprep.mubr.msk.f32.mxu0 %vm1566_vm0, %v1567_v1 }
 0x112   :  { %v1208_v17 = vpop.f32.mrb[0].mxu0 }
 0x113   :  { %v186_v18 = vpop.f32.mrb[1].mxu0  ;;  %v192_v40 = vadd.f32 %v1208_v17, %v1707_v16 }
 0x114   :  { %v187_v19 = vadd.f32 %v1707_v16, %v186_v18 }
 0x116   :  { %v1211_v2 = vpop.f32.mrb[2].mxu0 }
 0x117   :  { %v301_v20 = vpop.f32.mrb[0].mxu1  ;;  %v196_v3 = vpop.f32.mrb[3].mxu0 }
 0x118   :  { %v305_v21 = vadd.f32 %v301_v20, %v187_v19  ;;  %v1228_v22 = vpop.f32.mrb[1].mxu1  ;;  %v197_v10 = vadd.f32 %v1707_v16, %v196_v3 }
 0x11a   :  { %v1129_v23 = vmul.f32 -1.442695, %v305_v21 }
 0x11b   :  { %v1736_v4 = vpop.f32.mrb[4].mxu0 }
 0x11c   :  { %1372 = vpow2.f32 %v1129_v23  ;;  %v1738_v5 = vpop.f32.mrb[5].mxu0 }
 0x11f   :  { %v1740_v6 = vpop.f32.mrb[6].mxu0 }
 0x120   :  { %v1742_v7 = vpop.f32.mrb[7].mxu0 }
 0x126   :  { %v1373_v24 = vpop.eup %1372 }
 0x127   :  { %v309_v25 = vadd.f32 1.0, %v1373_v24 }
 0x129   :  { %1374 = vrcp.f32 %v309_v25 }
 0x133   :  { %v1375_v26 = vpop.eup %1374 }
 0x134   :  { %v312_v27 = vmul.f32 2.0, %v1375_v26 }
 0x136   :  { %v1130_v28 = vadd.f32 -1.0, %v312_v27 }
 0x138   :  { %320 = vrot.lane.b32.xlu0 %v1130_v28, %s1568_s5 }
 0x13c   :  { %315 = vrot.lane.b32.xlu0 %v230_v29, %s1568_s5 }
 0x1aa   :  { %v321_v30 = vpop.permute.xlu0 %320 }
 0x1ab   :  { %v323_v31 = vmul.f32 %v1375_v26, %v321_v30 }
 0x1ad   :  { %325 = vrot.lane.b32.xlu1 %v323_v31, %s1568_s5  ;;  %v202_v31 = vadd.f32 %v1211_v2, %v1707_v16 }
 0x1ae   :  { %v316_v32 = vpop.permute.xlu0 %315 }
 0x1af   :  { %v318_v33 = vmul.f32 %v1375_v26, %v316_v32 }
 0x21f   :  { %v326_v34 = vpop.permute.xlu1 %325 }
 0x220   :  { %v328_v35 = vadd.f32 %v326_v34, %v318_v33 }
 0x222   :  { %1376 = vtanh.f32 %v328_v35 }
 0x22c   :  { %v1377_v36 = vpop.eup %1376 }
 0x22d   :  { %331 = vrot.lane.b32.xlu1 %v1377_v36, %s1568_s5 }
 0x29f   :  { %v332_v37 = vpop.permute.xlu1 %331 }
 0x2a0   :  { %v334_v38 = vmul.f32 %v1375_v26, %v332_v37 }
 0x2a2   :  { %336 = vrot.lane.b32.xlu0 %v334_v38, %s1569_s3 }
 0x314   :  { %v337_v39 = vpop.permute.xlu0 %336 }
 0x315   :  { %339 = vst.msk [vmem:[#allocation8] sm:$0xff] %vm74_vm2, %v337_v39  ;;  %1238 = vmatmul.mubr.msk.f32.vlgmr.msra.gmra.mrb[2].mxu1 %vm74_vm2, %v337_v39 }
 0x316   :  { %1330 = vmatpush3.bf16.msra.mxu1 %v1674_v8  ;;  %1259 = vmatprep.mubr.msk.f32.mxu1 %vm1566_vm0, %v1567_v1 }
 0x317   :  { %1331 = vmatprep.subr.bf16.mxu1 %v1565_v0 }
 0x31a   :  { %1333 = vmatpush3.bf16.msra.mxu1 %v1682_v13 }
 0x31b   :  { %1340 = vmatprep.subr.bf16.mxu1 %v1565_v0 }
 0x3e8   :  { %v408_v41 = vpop.f32.mrb[2].mxu1 }
 0x3e9   :  { %v412_v42 = vadd.f32 %v408_v41, %v192_v40  ;;  %v1239_v43 = vpop.f32.mrb[3].mxu1 }
 0x3eb   :  { %v1132_v44 = vmul.f32 -1.442695, %v412_v42 }
 0x3ed   :  { %1378 = vpow2.f32 %v1132_v44 }
 0x3f7   :  { %v1379_v45 = vpop.eup %1378 }
 0x3f8   :  { %v416_v46 = vadd.f32 1.0, %v1379_v45 }
 0x3fa   :  { %1380 = vrcp.f32 %v416_v46 }
 0x404   :  { %v1381_v47 = vpop.eup %1380 }
 0x405   :  { %v419_v48 = vmul.f32 2.0, %v1381_v47  ;;  %v421_v52 = vmul.f32 %v1381_v47, %v328_v35 }
 0x407   :  { %v1133_v49 = vadd.f32 -1.0, %v419_v48 }
 0x409   :  { %423 = vrot.lane.b32.xlu1 %v1133_v49, %s1568_s5 }
 0x47b   :  { %v424_v50 = vpop.permute.xlu1 %423 }
 0x47c   :  { %v426_v51 = vmul.f32 %v1381_v47, %v424_v50  ;;  %v207_v50 = vadd.f32 %v1707_v16, %v1738_v5 }
 0x47e   :  { %428 = vrot.lane.b32.xlu0 %v426_v51, %s1568_s5 }
 0x4f0   :  { %v429_v53 = vpop.permute.xlu0 %428 }
 0x4f1   :  { %v431_v54 = vadd.f32 %v429_v53, %v421_v52 }
 0x4f3   :  { %1382 = vtanh.f32 %v431_v54 }
 0x4fd   :  { %v1383_v61 = vpop.eup %1382 }
 0x4fe   :  { %434 = vrot.lane.b32.xlu1 %v1383_v61, %s1568_s5 }
 0x570   :  { %v435_v62 = vpop.permute.xlu1 %434 }
 0x571   :  { %v437_v63 = vmul.f32 %v1381_v47, %v435_v62 }
 0x573   :  { %439 = vrot.lane.b32.xlu0 %v437_v63, %s1569_s3 }
 0x5e5   :  { %v440_v9 = vpop.permute.xlu0 %439 }
 0x5e6   :  { %443 = vst.msk [vmem:[#allocation8 + $0x8] sm:$0xff] %vm74_vm2, %v440_v9  ;;  %1249 = vmatmul.mubr.msk.f32.vlgmr.msra.gmra.mrb[8].mxu0 %vm74_vm2, %v440_v9 }
 0x5e7   :  { %1336 = vmatpush3.bf16.msra.mxu0 %v1674_v8  ;;  %1270 = vmatprep.mubr.msk.f32.mxu0 %vm1566_vm0, %v1567_v1 }
 0x5e8   :  { %1337 = vmatprep.subr.bf16.mxu0 %v1565_v0 }
 0x5eb   :  { %1339 = vmatpush3.bf16.msra.mxu0 %v1682_v13 }
 0x5ec   :  { %1346 = vmatprep.subr.bf16.mxu0 %v1565_v0 }
 0x6b9   :  { %v512_v11 = vpop.f32.mrb[8].mxu0 }
 0x6ba   :  { %v516_v12 = vadd.f32 %v512_v11, %v197_v10  ;;  %v1250_v14 = vpop.f32.mrb[9].mxu0  ;;  %v212_v11 = vadd.f32 %v1736_v4, %v1707_v16 }
 0x6bc   :  { %v1135_v15 = vmul.f32 -1.442695, %v516_v12 }
 0x6be   :  { %1384 = vpow2.f32 %v1135_v15 }
 0x6c8   :  { %v1385_v17 = vpop.eup %1384 }
 0x6c9   :  { %v520_v18 = vadd.f32 1.0, %v1385_v17 }
 0x6cb   :  { %1386 = vrcp.f32 %v520_v18 }
 0x6d5   :  { %v1387_v19 = vpop.eup %1386 }
 0x6d6   :  { %v523_v20 = vmul.f32 2.0, %v1387_v19  ;;  %v525_v24 = vmul.f32 %v1387_v19, %v431_v54 }
 0x6d8   :  { %v1136_v21 = vadd.f32 -1.0, %v523_v20 }
 0x6da   :  { %527 = vrot.lane.b32.xlu1 %v1136_v21, %s1568_s5 }
 0x74c   :  { %v528_v22 = vpop.permute.xlu1 %527 }
 0x74d   :  { %v530_v23 = vmul.f32 %v1387_v19, %v528_v22 }
 0x74f   :  { %532 = vrot.lane.b32.xlu0 %v530_v23, %s1568_s5 }
 0x7c1   :  { %v533_v25 = vpop.permute.xlu0 %532 }
 0x7c2   :  { %v535_v26 = vadd.f32 %v533_v25, %v525_v24 }
 0x7c4   :  { %1388 = vtanh.f32 %v535_v26 }
 0x7ce   :  { %v1389_v27 = vpop.eup %1388 }
 0x7cf   :  { %538 = vrot.lane.b32.xlu1 %v1389_v27, %s1568_s5  ;;  %v217_v27 = vadd.f32 %v1707_v16, %v1742_v7 }
 0x841   :  { %v539_v28 = vpop.permute.xlu1 %538 }
 0x842   :  { %v541_v29 = vmul.f32 %v1387_v19, %v539_v28 }
 0x844   :  { %543 = vrot.lane.b32.xlu0 %v541_v29, %s1569_s3 }
 0x8b6   :  { %v544_v30 = vpop.permute.xlu0 %543 }
 0x8b7   :  { %547 = vst.msk [vmem:[#allocation8 + $0x10] sm:$0xff] %vm74_vm2, %v544_v30  ;;  %1260 = vmatmul.mubr.msk.f32.vlgmr.msra.gmra.mrb[4].mxu1 %vm74_vm2, %v544_v30 }
 0x8b8   :  { %1342 = vmatpush3.bf16.msra.mxu1 %v1674_v8  ;;  %1281 = vmatprep.mubr.msk.f32.mxu1 %vm1566_vm0, %v1567_v1 }
 0x8b9   :  { %1343 = vmatprep.subr.bf16.mxu1 %v1565_v0 }
 0x8bc   :  { %1345 = vmatpush3.bf16.msra.mxu1 %v1682_v13 }
 0x8bd   :  { %1352 = vmatprep.subr.bf16.mxu1 %v1565_v0 }
 0x98a   :  { %v616_v32 = vpop.f32.mrb[4].mxu1 }
 0x98b   :  { %v620_v33 = vadd.f32 %v616_v32, %v202_v31  ;;  %v1261_v34 = vpop.f32.mrb[5].mxu1 }
 0x98d   :  { %v1138_v35 = vmul.f32 -1.442695, %v620_v33 }
 0x98f   :  { %1390 = vpow2.f32 %v1138_v35 }
 0x999   :  { %v1391_v36 = vpop.eup %1390 }
 0x99a   :  { %v624_v37 = vadd.f32 1.0, %v1391_v36 }
 0x99c   :  { %1392 = vrcp.f32 %v624_v37 }
 0x9a6   :  { %v1393_v38 = vpop.eup %1392 }
 0x9a7   :  { %v627_v39 = vmul.f32 2.0, %v1393_v38  ;;  %v629_v43 = vmul.f32 %v1393_v38, %v535_v26 }
 0x9a9   :  { %v1139_v40 = vadd.f32 -1.0, %v627_v39 }
 0x9ab   :  { %631 = vrot.lane.b32.xlu1 %v1139_v40, %s1568_s5 }
 0xa1d   :  { %v632_v41 = vpop.permute.xlu1 %631 }
 0xa1e   :  { %v634_v42 = vmul.f32 %v1393_v38, %v632_v41 }
 0xa20   :  { %636 = vrot.lane.b32.xlu0 %v634_v42, %s1568_s5 }
 0xa92   :  { %v637_v44 = vpop.permute.xlu0 %636 }
 0xa93   :  { %v639_v45 = vadd.f32 %v637_v44, %v629_v43 }
 0xa95   :  { %1394 = vtanh.f32 %v639_v45 }
 0xa9f   :  { %v1395_v46 = vpop.eup %1394 }
 0xaa0   :  { %642 = vrot.lane.b32.xlu1 %v1395_v46, %s1568_s5 }
 0xb12   :  { %v643_v47 = vpop.permute.xlu1 %642 }
 0xb13   :  { %v645_v48 = vmul.f32 %v1393_v38, %v643_v47 }
 0xb15   :  { %647 = vrot.lane.b32.xlu0 %v645_v48, %s1569_s3 }
 0xb87   :  { %v648_v49 = vpop.permute.xlu0 %647 }
 0xb88   :  { %651 = vst.msk [vmem:[#allocation8 + $0x18] sm:$0xff] %vm74_vm2, %v648_v49  ;;  %1271 = vmatmul.mubr.msk.f32.vlgmr.msra.gmra.mrb[10].mxu0 %vm74_vm2, %v648_v49 }
 0xb89   :  { %1348 = vmatpush3.bf16.msra.mxu0 %v1674_v8  ;;  %1292 = vmatprep.mubr.msk.f32.mxu0 %vm1566_vm0, %v1567_v1 }
 0xb8a   :  { %1349 = vmatprep.subr.bf16.mxu0 %v1565_v0 }
 0xb8d   :  { %1351 = vmatpush3.bf16.msra.mxu0 %v1682_v13 }
 0xc5b   :  { %v720_v51 = vpop.f32.mrb[10].mxu0 }
 0xc5c   :  { %v724_v52 = vadd.f32 %v720_v51, %v207_v50  ;;  %v1272_v53 = vpop.f32.mrb[11].mxu0 }
 0xc5e   :  { %v1141_v54 = vmul.f32 -1.442695, %v724_v52 }
 0xc60   :  { %1396 = vpow2.f32 %v1141_v54 }
 0xc6a   :  { %v1397_v55 = vpop.eup %1396 }
 0xc6b   :  { %v728_v56 = vadd.f32 1.0, %v1397_v55 }
 0xc6d   :  { %1398 = vrcp.f32 %v728_v56 }
 0xc77   :  { %v1399_v57 = vpop.eup %1398 }
 0xc78   :  { %v731_v58 = vmul.f32 2.0, %v1399_v57  ;;  %v733_v62 = vmul.f32 %v1399_v57, %v639_v45  ;;  %v222_v45 = vadd.f32 %v1740_v6, %v1707_v16 }
 0xc7a   :  { %v1142_v59 = vadd.f32 -1.0, %v731_v58 }
 0xc7c   :  { %735 = vrot.lane.b32.xlu1 %v1142_v59, %s1568_s5 }
 0xcee   :  { %v736_v60 = vpop.permute.xlu1 %735 }
 0xcef   :  { %v738_v61 = vmul.f32 %v1399_v57, %v736_v60 }
 0xcf1   :  { %740 = vrot.lane.b32.xlu0 %v738_v61, %s1568_s5 }
 0xd63   :  { %v741_v63 = vpop.permute.xlu0 %740 }
 0xd64   :  { %v743_v2 = vadd.f32 %v741_v63, %v733_v62 }
 0xd66   :  { %1400 = vtanh.f32 %v743_v2 }
 0xd70   :  { %v1401_v3 = vpop.eup %1400 }
 0xd71   :  { %746 = vrot.lane.b32.xlu1 %v1401_v3, %s1568_s5 }
 0xde3   :  { %v747_v5 = vpop.permute.xlu1 %746 }
 0xde4   :  { %v749_v9 = vmul.f32 %v1399_v57, %v747_v5 }
 0xde6   :  { %751 = vrot.lane.b32.xlu0 %v749_v9, %s1569_s3 }
 0xe58   :  { %v752_v10 = vpop.permute.xlu0 %751 }
 0xe59   :  { %755 = vst.msk [vmem:[#allocation8 + $0x20] sm:$0xff] %vm74_vm2, %v752_v10  ;;  %1282 = vmatmul.mubr.msk.f32.vlgmr.msra.gmra.mrb[6].mxu1 %vm74_vm2, %v752_v10 }
 0xe5a   :  { %1354 = vmatpush3.bf16.msra.mxu1 %v1674_v8  ;;  %1303 = vmatprep.mubr.msk.f32.mxu1 %vm1566_vm0, %v1567_v1 }
 0xe5b   :  { %1355 = vmatprep.subr.bf16.mxu1 %v1565_v0 }
 0xe5e   :  { %1357 = vmatpush3.bf16.msra.mxu1 %v1682_v13 }
 0xf2c   :  { %v824_v12 = vpop.f32.mrb[6].mxu1 }
 0xf2d   :  { %v828_v14 = vadd.f32 %v824_v12, %v212_v11  ;;  %v1283_v15 = vpop.f32.mrb[7].mxu1 }
 0xf2f   :  { %v1144_v17 = vmul.f32 -1.442695, %v828_v14 }
 0xf31   :  { %1402 = vpow2.f32 %v1144_v17 }
 0xf3b   :  { %v1403_v18 = vpop.eup %1402 }
 0xf3c   :  { %v832_v19 = vadd.f32 1.0, %v1403_v18 }
 0xf3e   :  { %1404 = vrcp.f32 %v832_v19 }
 0xf48   :  { %v1405_v20 = vpop.eup %1404 }
 0xf49   :  { %v835_v8 = vmul.f32 2.0, %v1405_v20  ;;  %v837_v13 = vmul.f32 %v1405_v20, %v743_v2 }
 0xf4b   :  { %v1145_v21 = vadd.f32 -1.0, %v835_v8 }
 0xf4d   :  { %839 = vrot.lane.b32.xlu1 %v1145_v21, %s1568_s5 }
 0xfbf   :  { %v840_v1 = vpop.permute.xlu1 %839 }
 0xfc0   :  { %v842_v0 = vmul.f32 %v1405_v20, %v840_v1 }
 0xfc2   :  { %844 = vrot.lane.b32.xlu0 %v842_v0, %s1568_s5 }
0x1034   :  { %v845_v22 = vpop.permute.xlu0 %844 }
0x1035   :  { %v847_v4 = vadd.f32 %v845_v22, %v837_v13 }
0x1037   :  { %1406 = vtanh.f32 %v847_v4 }
0x1041   :  { %v1407_v23 = vpop.eup %1406 }
0x1042   :  { %850 = vrot.lane.b32.xlu1 %v1407_v23, %s1568_s5 }
0x10b4   :  { %v851_v24 = vpop.permute.xlu1 %850 }
0x10b5   :  { %v853_v25 = vmul.f32 %v1405_v20, %v851_v24 }
0x10b7   :  { %855 = vrot.lane.b32.xlu0 %v853_v25, %s1569_s3 }
0x1129   :  { %v856_v26 = vpop.permute.xlu0 %855 }
0x112a   :  { %859 = vst.msk [vmem:[#allocation8 + $0x28] sm:$0xff] %vm74_vm2, %v856_v26  ;;  %1293 = vmatmul.mubr.msk.f32.vlgmr.msra.gmra.mrb[12].mxu0 %vm74_vm2, %v856_v26 }
0x11fd   :  { %v928_v28 = vpop.f32.mrb[12].mxu0 }
0x11fe   :  { %v932_v29 = vadd.f32 %v928_v28, %v217_v27  ;;  %v1294_v30 = vpop.f32.mrb[13].mxu0 }
0x1200   :  { %v1147_v31 = vmul.f32 -1.442695, %v932_v29 }
0x1202   :  { %1408 = vpow2.f32 %v1147_v31 }
0x120c   :  { %v1409_v32 = vpop.eup %1408 }
0x120d   :  { %v936_v33 = vadd.f32 1.0, %v1409_v32 }
0x120f   :  { %1410 = vrcp.f32 %v936_v33 }
0x1219   :  { %v1411_v34 = vpop.eup %1410 }
0x121a   :  { %v939_v35 = vmul.f32 2.0, %v1411_v34  ;;  %v941_v39 = vmul.f32 %v1411_v34, %v847_v4 }
0x121c   :  { %v1148_v36 = vadd.f32 -1.0, %v939_v35 }
0x121e   :  { %943 = vrot.lane.b32.xlu1 %v1148_v36, %s1568_s5 }
0x1290   :  { %v944_v37 = vpop.permute.xlu1 %943 }
0x1291   :  { %v946_v38 = vmul.f32 %v1411_v34, %v944_v37 }
0x1293   :  { %948 = vrot.lane.b32.xlu0 %v946_v38, %s1568_s5 }
0x1305   :  { %v949_v40 = vpop.permute.xlu0 %948 }
0x1306   :  { %v951_v7 = vadd.f32 %v949_v40, %v941_v39 }
0x1308   :  { %1412 = vtanh.f32 %v951_v7 }
0x1312   :  { %v1413_v41 = vpop.eup %1412 }
0x1313   :  { %954 = vrot.lane.b32.xlu1 %v1413_v41, %s1568_s5 }
0x1385   :  { %v955_v42 = vpop.permute.xlu1 %954 }
0x1386   :  { %v957_v43 = vmul.f32 %v1411_v34, %v955_v42 }
0x1388   :  { %959 = vrot.lane.b32.xlu0 %v957_v43, %s1569_s3 }
0x13fa   :  { %v960_v44 = vpop.permute.xlu0 %959 }
0x13fb   :  { %963 = vst.msk [vmem:[#allocation8 + $0x30] sm:$0xff] %vm74_vm2, %v960_v44  ;;  %1304 = vmatmul.mubr.msk.f32.vlgmr.msra.gmra.mrb[8].mxu1 %vm74_vm2, %v960_v44 }
0x14ce   :  { %v1032_v46 = vpop.f32.mrb[8].mxu1 }
0x14cf   :  { %v1036_v47 = vadd.f32 %v1032_v46, %v222_v45  ;;  %v1305_v48 = vpop.f32.mrb[9].mxu1 }
0x14d1   :  { %v1150_v49 = vmul.f32 -1.442695, %v1036_v47 }
0x14d3   :  { %1414 = vpow2.f32 %v1150_v49 }
0x14dd   :  { %v1415_v50 = vpop.eup %1414 }
0x14de   :  { %v1040_v51 = vadd.f32 1.0, %v1415_v50 }
0x14e0   :  { %1416 = vrcp.f32 %v1040_v51 }
0x14ea   :  { %v1417_v52 = vpop.eup %1416 }
0x14eb   :  { %v1043_v53 = vmul.f32 2.0, %v1417_v52  ;;  %v1045_v57 = vmul.f32 %v1417_v52, %v951_v7 }
0x14ed   :  { %v1151_v54 = vadd.f32 -1.0, %v1043_v53 }
0x14ef   :  { %1047 = vrot.lane.b32.xlu1 %v1151_v54, %s1568_s5 }
0x1561   :  { %v1048_v55 = vpop.permute.xlu1 %1047 }
0x1562   :  { %v1050_v56 = vmul.f32 %v1417_v52, %v1048_v55 }
0x1564   :  { %1052 = vrot.lane.b32.xlu0 %v1050_v56, %s1568_s5 }
0x15d6   :  { %v1053_v58 = vpop.permute.xlu0 %1052 }
0x15d7   :  { %v1055_v16 = vadd.f32 %v1053_v58, %v1045_v57 }
0x15d9   :  { %1418 = vtanh.f32 %v1055_v16 }
0x15e3   :  { %v1419_v6 = vpop.eup %1418 }
0x15e4   :  { %1058 = vrot.lane.b32.xlu1 %v1419_v6, %s1568_s5 }
0x15e8   :  { %1070 = vrot.lane.b32.xlu1 %v1055_v16, %s1570_s25 }
0x1656   :  { %v1059_v59 = vpop.permute.xlu1 %1058 }
0x1657   :  { %v1061_v60 = vmul.f32 %v1417_v52, %v1059_v59 }
0x1659   :  { %1063 = vrot.lane.b32.xlu0 %v1061_v60, %s1569_s3 }
0x165a   :  { %v1071_v61 = vpop.permute.xlu1 %1070 }
0x165b   :  { %1073 = vst.msk [vmem:[#allocation11] sm:$0xff] %vm74_vm2, %v1071_v61 }
0x16cb   :  { %v1064_v62 = vpop.permute.xlu0 %1063 }
0x16cc   :  { %1067 = vst.msk [vmem:[#allocation8 + $0x38] sm:$0xff] %vm74_vm2, %v1064_v62  ;;  %1068 = vst.msk [vmem:[#allocation9] sm:$0xff] %vm74_vm2, %v1064_v62 }
0x16cd   :  { %1497 = shalt.err (!%p1494_p0)
}
0x16ce   :  { %s1498_s13 = scalar_lea.hbm %s1875_s7, 128 }
0x16cf   :  { %p1499_p1 = scmp.ne.s32.totalorder %s1875_s7, %s1498_s13  ;;  %p1502_p2 = scmp.lt.u32.totalorder %s1498_s13, %s1875_s7 }
0x16d1   :  { %p1504_p3 = pnand %p1502_p2, %p1499_p1 }
0x16d3   :  { %1507 = shalt.err (!%p1504_p3)
}
0x16d4   :  { %1095 = dma.vmem_to_hbm [thread:$0]  %s1093_s27, 128, %s1875_s7, [#allocation10]  }
0x16d5   :  { %s1508_s30 = scalar_lea.vmem %s1813_s1, 1024  ;;  %p1513_p5 = scmp.lt.s32.totalorder %s1813_s1, %s1813_s1 }
0x16d6   :  { %p1509_p4 = scmp.ne.s32.totalorder %s1813_s1, %s1508_s30  ;;  %p1514_p6 = scmp.lt.s32.totalorder %s1508_s30, %s1508_s30 }
0x16d8   :  { %p1515_p7 = por %p1514_p6, %p1513_p5 }
0x16da   :  { %p1516_p8 = pnand %p1515_p7, %p1509_p4 }
0x16dc   :  { %1519 = shalt.err (!%p1516_p8)
}
0x16dd   :  { %s1520_s4 = scalar_lea.hbm %s1874_s6, 1024 }
0x16de   :  { %p1521_p9 = scmp.ne.s32.totalorder %s1874_s6, %s1520_s4  ;;  %p1524_p10 = scmp.lt.u32.totalorder %s1520_s4, %s1874_s6 }
0x16e0   :  { %p1526_p11 = pnand %p1524_p10, %p1521_p9 }
0x16e2   :  { %1529 = shalt.err (!%p1526_p11)
}
0x16e3   :  { %1085 = dma.vmem_to_hbm [thread:$0]  %s1813_s1, 1024, %s1874_s6, [#allocation4], %s1562_s17, %s1562_s17, %s1563_s18  }
0x16e4   :  { %s1530_s25 = scalar_lea.vmem %s1817_s9, 128  ;;  %p1535_p13 = scmp.lt.s32.totalorder %s1817_s9, %s1817_s9 }
0x16e5   :  { %p1531_p12 = scmp.ne.s32.totalorder %s1817_s9, %s1530_s25  ;;  %p1536_p0 = scmp.lt.s32.totalorder %s1530_s25, %s1530_s25 }
0x16e7   :  { %p1537_p1 = por %p1536_p0, %p1535_p13 }
0x16e9   :  { %p1538_p2 = pnand %p1537_p1, %p1531_p12 }
0x16eb   :  { %1541 = shalt.err (!%p1538_p2)
}
0x16ec   :  { %s1542_s29 = scalar_lea.hbm %s1876_s8, 128 }
0x16ed   :  { %p1543_p3 = scmp.ne.s32.totalorder %s1876_s8, %s1542_s29  ;;  %p1546_p4 = scmp.lt.u32.totalorder %s1542_s29, %s1876_s8 }
0x16ef   :  { %p1548_p5 = pnand %p1546_p4, %p1543_p3 }
0x16f1   :  { %1551 = shalt.err (!%p1548_p5)
}
0x16f2   :  { %1105 = dma.vmem_to_hbm [thread:$0]  %s1817_s9, 128, %s1876_s8, [#allocation10]  }
0x16f3   :  { %1556 = dma.done.wait [#allocation4], 1024  }
0x16f4   :  { %1557 = vsyncadd [#allocation4], 4294966272 }
0x16f5   :  { %1558 = dma.done.wait [#allocation10], 256  }
0x16f6   :  { %1559 = vsyncadd [#allocation10], 4294967040 }
0x16f7   :  { %1115 = vsyncpa [#allocation3], 1 }
0x16f8   :  { %1116 = vsyncpa [#allocation6], 1 }
0x16f9   :  { %1117 = vsyncpa [#allocation4], 1 }
0x16fa   :  { %1118 = vsyncpa [#allocation10], 1 }

// kernel: tpu_custom_call.1
= control target key start
LH: loop header
LB: loop body
LE: loop exit
PB: predicated region body
PF: predicated region fallthrough
CT: control target
= control target key end

     0   :  { %14 = vsyncpa [#allocation3], 0  ;;  %s1868_s0 = inlined_call_operand.hbm [shape: f32[8,8,16], index: 0, kind: input, shape index: {}]   ;;  %s1869_s1 = inlined_call_operand.hbm [shape: f32[16,128], index: 1, kind: input, shape index: {}]   ;;  %s1870_s2 = inlined_call_operand.hbm [shape: f32[32,128], index: 2, kind: input, shape index: {}]   ;;  %s1871_s3 = inlined_call_operand.vmem [shape: f32[1,128], index: 3, kind: input, shape index: {}]   ;;  %s1872_s4 = inlined_call_operand.vmem [shape: f32[8,32], index: 4, kind: input, shape index: {}]   ;;  %s1873_s5 = inlined_call_operand.vmem [shape: f32[8,32], index: 5, kind: input, shape index: {}]   ;;  %s1874_s6 = inlined_call_operand.hbm [shape: f32[8,8,32], index: 6, kind: output, shape index: {0}]   ;;  %s1875_s7 = inlined_call_operand.hbm [shape: f32[8,32], index: 7, kind: output, shape index: {1}]   ;;  %s1876_s8 = inlined_call_operand.hbm [shape: f32[8,32], index: 8, kind: output, shape index: {2}]  }
   0x1   :  { %15 = vsyncpa [#allocation6], 0 }
   0x2   :  { %16 = vsyncpa [#allocation4], 0 }
   0x3   :  { %17 = vsyncpa [#allocation10], 0  ;;  %s1560_s27 = smov [#allocation5]   ;;  %s1561_s29 = smov [#allocation2]  }
   0x4   :  { %s35_s28 = sshll.u32 %s1560_s27, 4  ;;  %s23_s30 = sshll.u32 %s1561_s29, 4  ;;  %s36_s28 = int_to_ptr.vmem [resolvable:$true] %s35_s28  ;;  %s1619_s30 = int_to_ptr.vmem [resolvable:$true] %s23_s30 }
   0x5   :  { %s1420_s11 = scalar_lea.hbm %s1869_s1, 256 }
   0x6   :  { %p1421_p0 = scmp.ne.s32.totalorder %s1869_s1, %s1420_s11  ;;  %p1424_p1 = scmp.lt.u32.totalorder %s1420_s11, %s1869_s1 }
   0x8   :  { %p1426_p2 = pnand %p1424_p1, %p1421_p0 }
   0xa   :  { %1429 = shalt.err (!%p1426_p2)
}
   0xb   :  { %s1430_s16 = scalar_lea.vmem %s36_s28, 256  ;;  %p1435_p4 = scmp.lt.s32.totalorder %s36_s28, %s36_s28 }
   0xc   :  { %p1431_p3 = scmp.ne.s32.totalorder %s36_s28, %s1430_s16  ;;  %p1436_p5 = scmp.lt.s32.totalorder %s1430_s16, %s1430_s16 }
   0xe   :  { %p1437_p6 = por %p1436_p5, %p1435_p4 }
  0x10   :  { %p1438_p7 = pnand %p1437_p6, %p1431_p3 }
  0x12   :  { %1441 = shalt.err (!%p1438_p7)
}
  0x13   :  { %s1562_s17 = smov 128   ;;  %s1563_s18 = smov 8  }
  0x14   :  { %41 = dma.hbm_to_vmem [thread:$0]  %s1869_s1, 256, %s36_s28, [#allocation6], %s1562_s17, %s1562_s17, %s1563_s18  }
  0x15   :  { %s1442_s23 = scalar_lea.hbm %s1868_s0, 1024 }
  0x16   :  { %p1443_p8 = scmp.ne.s32.totalorder %s1868_s0, %s1442_s23  ;;  %p1446_p9 = scmp.lt.u32.totalorder %s1442_s23, %s1868_s0 }
  0x18   :  { %p1448_p10 = pnand %p1446_p9, %p1443_p8 }
  0x1a   :  { %1451 = shalt.err (!%p1448_p10)
}
  0x1b   :  { %s1452_s29 = scalar_lea.vmem %s1619_s30, 1024  ;;  %p1457_p12 = scmp.lt.s32.totalorder %s1619_s30, %s1619_s30 }
  0x1c   :  { %p1453_p11 = scmp.ne.s32.totalorder %s1619_s30, %s1452_s29  ;;  %p1458_p13 = scmp.lt.s32.totalorder %s1452_s29, %s1452_s29 }
  0x1e   :  { %p1459_p0 = por %p1458_p13, %p1457_p12 }
  0x20   :  { %p1460_p1 = pnand %p1459_p0, %p1453_p11 }
  0x22   :  { %1463 = shalt.err (!%p1460_p1)
}
  0x23   :  { %29 = dma.hbm_to_vmem [thread:$0]  %s1868_s0, 1024, %s1619_s30, [#allocation3], %s1562_s17, %s1562_s17, %s1563_s18  }
  0x24   :  { %s1564_s9 = smov [#allocation7]   ;;  %s1464_s13 = scalar_lea.hbm %s1870_s2, 512 }
  0x25   :  { %s47_s10 = sshll.u32 %s1564_s9, 4  ;;  %p1465_p2 = scmp.ne.s32.totalorder %s1870_s2, %s1464_s13  ;;  %s48_s10 = int_to_ptr.vmem [resolvable:$true] %s47_s10 }
  0x26   :  { %p1468_p3 = scmp.lt.u32.totalorder %s1464_s13, %s1870_s2 }
  0x28   :  { %p1470_p4 = pnand %p1468_p3, %p1465_p2 }
  0x2a   :  { %1473 = shalt.err (!%p1470_p4)
}
  0x2b   :  { %s1474_s20 = scalar_lea.vmem %s48_s10, 512  ;;  %p1479_p6 = scmp.lt.s32.totalorder %s48_s10, %s48_s10 }
  0x2c   :  { %p1475_p5 = scmp.ne.s32.totalorder %s48_s10, %s1474_s20  ;;  %p1480_p7 = scmp.lt.s32.totalorder %s1474_s20, %s1474_s20 }
  0x2e   :  { %p1481_p8 = por %p1480_p7, %p1479_p6 }
  0x30   :  { %p1482_p9 = pnand %p1481_p8, %p1475_p5 }
  0x32   :  { %1485 = shalt.err (!%p1482_p9)
}
  0x33   :  { %53 = dma.hbm_to_vmem [thread:$0]  %s1870_s2, 512, %s48_s10, [#allocation6], %s1562_s17, %s1562_s17, %s1563_s18  }
  0x34   :  { %1552 = dma.done.wait [#allocation3], 1024  }
  0x35   :  { %1553 = vsyncadd [#allocation3], 4294966272 }
  0x36   :  { %1554 = dma.done.wait [#allocation6], 768  }
  0x37   :  { %1555 = vsyncadd [#allocation6], 4294966528  ;;  %v1565_v0 = vmov 0.0|0.0   ;;  %vm1566_vm0 = vmmov 0   ;;  %v1567_v1 = vmov 0.0   ;;  %vm95_vm1 = vcmask 130048  }
  0x38   :  { %1310 = vmatprep.subr.bf16.mxu1 %v1565_v0  ;;  %1226 = vmatprep.mubr.msk.f32.mxu1 %vm1566_vm0, %v1567_v1  ;;  %v86_v2 = vld [vmem:[#allocation5] sm:$0xff]  ;;  %v87_v3 = vld [vmem:[#allocation5 + $0x8] sm:$0xff]  ;;  %v225_v4 = vld [vmem:[#allocation7] sm:$0xff]  ;;  %vm74_vm2 = vcmask 261120   ;;  %s1570_s25 = smov 96   ;;  %s1571_s26 = smov [#allocation9]  }
  0x39   :  { %v1306_v5 = vpack.c.bf16 %v87_v3, %v86_v2  ;;  %v226_v6 = vld [vmem:[#allocation7 + $0x8] sm:$0xff]  ;;  %v78_v7 = vld [vmem:[#allocation2] sm:$0xff]  ;;  %v228_v10 = vld [vmem:[#allocation7 + $0x18] sm:$0xff]  ;;  %s1092_s27 = sshll.u32 %s1571_s26, 4  ;;  %s1572_s29 = smov [#allocation8]   ;;  %s1093_s27 = int_to_ptr.vmem [resolvable:$true] %s1092_s27 }
  0x3a   :  { %v1674_v8 = vpack.c.bf16 %v226_v6, %v225_v4  ;;  %1206 = vmatprep.mubr.msk.f32.mxu0 %vm95_vm1, %v78_v7  ;;  %v227_v9 = vld [vmem:[#allocation7 + $0x10] sm:$0xff]  ;;  %v79_v12 = vld [vmem:[#allocation2 + $0x8] sm:$0xff]  ;;  %v80_v55 = vld [vmem:[#allocation2 + $0x10] sm:$0xff]  ;;  %s1079_s1 = sshll.u32 %s1572_s29, 4  ;;  %s1573_s28 = smov [#allocation11]   ;;  %s1813_s1 = int_to_ptr.vmem [resolvable:$true] %s1079_s1 }
  0x3b   :  { %v73_v11 = vld [vmem:[%s1872_s4] sm:$0xff]  ;;  %1307 = vmatprep.subr.bf16.mxu0 %v1306_v5  ;;  %v1682_v13 = vpack.c.bf16 %v228_v10, %v227_v9  ;;  %v81_v56 = vld [vmem:[#allocation2 + $0x18] sm:$0xff]  ;;  %v83_v58 = vld [vmem:[#allocation2 + $0x28] sm:$0xff]  ;;  %s1102_s9 = sshll.u32 %s1573_s28, 4  ;;  %s1486_s10 = scalar_lea.vmem %s1093_s27, 128  ;;  %s1817_s9 = int_to_ptr.vmem [resolvable:$true] %s1102_s9 }
  0x3c   :  { %75 = vst.msk [vmem:[#allocation9] sm:$0xff] %vm74_vm2, %v73_v11  ;;  %1312 = vmatpush3.bf16.msra.mxu1 %v1674_v8  ;;  %1309 = vmatpush3.bf16.msra.mxu0 %v1306_v5  ;;  %v76_v15 = vld [vmem:[%s1873_s5] sm:$0xff]  ;;  %s1568_s5 = smov 32   ;;  %v84_v59 = vld [vmem:[#allocation2 + $0x30] sm:$0xff]  ;;  %v85_v60 = vld [vmem:[#allocation2 + $0x38] sm:$0xff]  ;;  %p1487_p10 = scmp.ne.s32.totalorder %s1093_s27, %s1486_s10 }
  0x3d   :  { %1313 = vmatprep.subr.bf16.mxu1 %v1565_v0  ;;  %1322 = vmatprep.subr.bf16.mxu0 %v1565_v0  ;;  %77 = vst.msk [vmem:[#allocation11] sm:$0xff] %vm74_vm2, %v76_v15  ;;  %v1707_v16 = vld [vmem:[%s1871_s3] ss:$0 sm:$0xff]  ;;  %s1569_s3 = smov 64   ;;  %p1491_p11 = scmp.lt.s32.totalorder %s1093_s27, %s1093_s27 }
  0x3e   :  { %v82_v57 = vld [vmem:[#allocation2 + $0x20] sm:$0xff]  ;;  %p1492_p12 = scmp.lt.s32.totalorder %s1486_s10, %s1486_s10 }
  0x3f   :  { %1207 = vmatmul.mubr.msk.f32.vlgmr.msra.gmra.mrb[0].mxu0 %vm95_vm1, %v79_v12 }
  0x40   :  { %1315 = vmatpush3.bf16.msra.mxu1 %v1682_v13  ;;  %1324 = vmatpush3.bf16.msra.mxu0 %v1674_v8  ;;  %p1493_p13 = por %p1492_p12, %p1491_p11 }
  0x41   :  { %1316 = vmatprep.subr.bf16.mxu1 %v1565_v0  ;;  %1325 = vmatprep.subr.bf16.mxu0 %v1565_v0 }
  0x42   :  { %1209 = vmatprep.mubr.msk.f32.mxu0 %vm95_vm1, %v80_v55  ;;  %p1494_p0 = pnand %p1493_p13, %p1487_p10 }
  0x43   :  { %v229_v14 = vld [vmem:[#allocation9] sm:$0xff]  ;;  %1210 = vmatmul.mubr.msk.f32.gmra.mrb[2].mxu0 %vm95_vm1, %v81_v56 }
  0x44   :  { %1227 = vmatmul.mubr.msk.f32.vlgmr.msra.gmra.mrb[0].mxu1 %vm74_vm2, %v229_v14  ;;  %1327 = vmatpush3.bf16.msra.mxu0 %v1682_v13  ;;  %v230_v29 = vld [vmem:[#allocation11] sm:$0xff] }
  0x45   :  { %1318 = vmatpush3.bf16.msra.mxu1 %v1674_v8  ;;  %1237 = vmatprep.mubr.msk.f32.mxu1 %vm1566_vm0, %v1567_v1 }
  0x46   :  { %1319 = vmatprep.subr.bf16.mxu1 %v1565_v0  ;;  %1334 = vmatprep.subr.bf16.mxu0 %v1565_v0 }
  0x47   :  { %1212 = vmatprep.mubr.msk.f32.mxu0 %vm95_vm1, %v82_v57 }
  0x48   :  { %1213 = vmatmul.mubr.msk.f32.gmra.mrb[4].mxu0 %vm95_vm1, %v83_v58 }
  0x49   :  { %1321 = vmatpush3.bf16.msra.mxu1 %v1682_v13  ;;  %1215 = vmatprep.mubr.msk.f32.mxu0 %vm95_vm1, %v84_v59 }
  0x4a   :  { %1328 = vmatprep.subr.bf16.mxu1 %v1565_v0 }
  0x4c   :  { %1216 = vmatmul.mubr.msk.f32.gmra.mrb[6].mxu0 %vm95_vm1, %v85_v60 }
  0x4d   :  { %1248 = vmatprep.mubr.msk.f32.mxu0 %vm1566_vm0, %v1567_v1 }
 0x112   :  { %v1208_v17 = vpop.f32.mrb[0].mxu0 }
 0x113   :  { %v186_v18 = vpop.f32.mrb[1].mxu0  ;;  %v192_v40 = vadd.f32 %v1208_v17, %v1707_v16 }
 0x114   :  { %v187_v19 = vadd.f32 %v1707_v16, %v186_v18 }
 0x116   :  { %v1211_v2 = vpop.f32.mrb[2].mxu0 }
 0x117   :  { %v301_v20 = vpop.f32.mrb[0].mxu1  ;;  %v196_v3 = vpop.f32.mrb[3].mxu0 }
 0x118   :  { %v305_v21 = vadd.f32 %v301_v20, %v187_v19  ;;  %v1228_v22 = vpop.f32.mrb[1].mxu1  ;;  %v197_v10 = vadd.f32 %v1707_v16, %v196_v3 }
 0x11a   :  { %v1129_v23 = vmul.f32 -1.442695, %v305_v21 }
 0x11b   :  { %v1736_v4 = vpop.f32.mrb[4].mxu0 }
 0x11c   :  { %1372 = vpow2.f32 %v1129_v23  ;;  %v1738_v5 = vpop.f32.mrb[5].mxu0 }
 0x11f   :  { %v1740_v6 = vpop.f32.mrb[6].mxu0 }
 0x120   :  { %v1742_v7 = vpop.f32.mrb[7].mxu0 }
 0x126   :  { %v1373_v24 = vpop.eup %1372 }
 0x127   :  { %v309_v25 = vadd.f32 1.0, %v1373_v24 }
 0x129   :  { %1374 = vrcp.f32 %v309_v25 }
 0x133   :  { %v1375_v26 = vpop.eup %1374 }
 0x134   :  { %v312_v27 = vmul.f32 2.0, %v1375_v26 }
 0x136   :  { %v1130_v28 = vadd.f32 -1.0, %v312_v27 }
 0x138   :  { %320 = vrot.lane.b32.xlu0 %v1130_v28, %s1568_s5 }
 0x13c   :  { %315 = vrot.lane.b32.xlu0 %v230_v29, %s1568_s5 }
 0x1aa   :  { %v321_v30 = vpop.permute.xlu0 %320 }
 0x1ab   :  { %v323_v31 = vmul.f32 %v1375_v26, %v321_v30 }
 0x1ad   :  { %325 = vrot.lane.b32.xlu1 %v323_v31, %s1568_s5  ;;  %v202_v31 = vadd.f32 %v1211_v2, %v1707_v16 }
 0x1ae   :  { %v316_v32 = vpop.permute.xlu0 %315 }
 0x1af   :  { %v318_v33 = vmul.f32 %v1375_v26, %v316_v32 }
 0x21f   :  { %v326_v34 = vpop.permute.xlu1 %325 }
 0x220   :  { %v328_v35 = vadd.f32 %v326_v34, %v318_v33 }
 0x222   :  { %1376 = vtanh.f32 %v328_v35 }
 0x22c   :  { %v1377_v36 = vpop.eup %1376 }
 0x22d   :  { %331 = vrot.lane.b32.xlu1 %v1377_v36, %s1568_s5 }
 0x29f   :  { %v332_v37 = vpop.permute.xlu1 %331 }
 0x2a0   :  { %v334_v38 = vmul.f32 %v1375_v26, %v332_v37 }
 0x2a2   :  { %336 = vrot.lane.b32.xlu0 %v334_v38, %s1569_s3 }
 0x314   :  { %v337_v39 = vpop.permute.xlu0 %336 }
 0x315   :  { %339 = vst.msk [vmem:[#allocation8] sm:$0xff] %vm74_vm2, %v337_v39  ;;  %1238 = vmatmul.mubr.msk.f32.vlgmr.msra.gmra.mrb[2].mxu1 %vm74_vm2, %v337_v39 }
 0x316   :  { %1330 = vmatpush3.bf16.msra.mxu1 %v1674_v8  ;;  %1259 = vmatprep.mubr.msk.f32.mxu1 %vm1566_vm0, %v1567_v1 }
 0x317   :  { %1331 = vmatprep.subr.bf16.mxu1 %v1565_v0 }
 0x31a   :  { %1333 = vmatpush3.bf16.msra.mxu1 %v1682_v13 }
 0x31b   :  { %1340 = vmatprep.subr.bf16.mxu1 %v1565_v0 }
 0x3e8   :  { %v408_v41 = vpop.f32.mrb[2].mxu1 }
 0x3e9   :  { %v412_v42 = vadd.f32 %v408_v41, %v192_v40  ;;  %v1239_v43 = vpop.f32.mrb[3].mxu1 }
 0x3eb   :  { %v1132_v44 = vmul.f32 -1.442695, %v412_v42 }
 0x3ed   :  { %1378 = vpow2.f32 %v1132_v44 }
 0x3f7   :  { %v1379_v45 = vpop.eup %1378 }
 0x3f8   :  { %v416_v46 = vadd.f32 1.0, %v1379_v45 }
 0x3fa   :  { %1380 = vrcp.f32 %v416_v46 }
 0x404   :  { %v1381_v47 = vpop.eup %1380 }
 0x405   :  { %v419_v48 = vmul.f32 2.0, %v1381_v47  ;;  %v421_v52 = vmul.f32 %v1381_v47, %v328_v35 }
 0x407   :  { %v1133_v49 = vadd.f32 -1.0, %v419_v48 }
 0x409   :  { %423 = vrot.lane.b32.xlu1 %v1133_v49, %s1568_s5 }
 0x47b   :  { %v424_v50 = vpop.permute.xlu1 %423 }
 0x47c   :  { %v426_v51 = vmul.f32 %v1381_v47, %v424_v50  ;;  %v207_v50 = vadd.f32 %v1707_v16, %v1738_v5 }
 0x47e   :  { %428 = vrot.lane.b32.xlu0 %v426_v51, %s1568_s5 }
 0x4f0   :  { %v429_v53 = vpop.permute.xlu0 %428 }
 0x4f1   :  { %v431_v54 = vadd.f32 %v429_v53, %v421_v52 }
 0x4f3   :  { %1382 = vtanh.f32 %v431_v54 }
 0x4fd   :  { %v1383_v61 = vpop.eup %1382 }
 0x4fe   :  { %434 = vrot.lane.b32.xlu1 %v1383_v61, %s1568_s5 }
 0x570   :  { %v435_v62 = vpop.permute.xlu1 %434 }
 0x571   :  { %v437_v63 = vmul.f32 %v1381_v47, %v435_v62 }
 0x573   :  { %439 = vrot.lane.b32.xlu0 %v437_v63, %s1569_s3 }
 0x5e5   :  { %v440_v9 = vpop.permute.xlu0 %439 }
 0x5e6   :  { %443 = vst.msk [vmem:[#allocation8 + $0x8] sm:$0xff] %vm74_vm2, %v440_v9  ;;  %1249 = vmatmul.mubr.msk.f32.vlgmr.msra.gmra.mrb[8].mxu0 %vm74_vm2, %v440_v9 }
 0x5e7   :  { %1336 = vmatpush3.bf16.msra.mxu0 %v1674_v8  ;;  %1270 = vmatprep.mubr.msk.f32.mxu0 %vm1566_vm0, %v1567_v1 }
 0x5e8   :  { %1337 = vmatprep.subr.bf16.mxu0 %v1565_v0 }
 0x5eb   :  { %1339 = vmatpush3.bf16.msra.mxu0 %v1682_v13 }
 0x5ec   :  { %1346 = vmatprep.subr.bf16.mxu0 %v1565_v0 }
 0x6b9   :  { %v512_v11 = vpop.f32.mrb[8].mxu0 }
 0x6ba   :  { %v516_v12 = vadd.f32 %v512_v11, %v197_v10  ;;  %v1250_v14 = vpop.f32.mrb[9].mxu0  ;;  %v212_v11 = vadd.f32 %v1736_v4, %v1707_v16 }
 0x6bc   :  { %v1135_v15 = vmul.f32 -1.442695, %v516_v12 }
 0x6be   :  { %1384 = vpow2.f32 %v1135_v15 }
 0x6c8   :  { %v1385_v17 = vpop.eup %1384 }
 0x6c9   :  { %v520_v18 = vadd.f32 1.0, %v1385_v17 }
 0x6cb   :  { %1386 = vrcp.f32 %v520_v18 }
 0x6d5   :  { %v1387_v19 = vpop.eup %1386 }
 0x6d6   :  { %v523_v20 = vmul.f32 2.0, %v1387_v19  ;;  %v525_v24 = vmul.f32 %v1387_v19, %v431_v54 }
 0x6d8   :  { %v1136_v21 = vadd.f32 -1.0, %v523_v20 }
 0x6da   :  { %527 = vrot.lane.b32.xlu1 %v1136_v21, %s1568_s5 }
 0x74c   :  { %v528_v22 = vpop.permute.xlu1 %527 }
 0x74d   :  { %v530_v23 = vmul.f32 %v1387_v19, %v528_v22 }
 0x74f   :  { %532 = vrot.lane.b32.xlu0 %v530_v23, %s1568_s5 }
 0x7c1   :  { %v533_v25 = vpop.permute.xlu0 %532 }
 0x7c2   :  { %v535_v26 = vadd.f32 %v533_v25, %v525_v24 }
 0x7c4   :  { %1388 = vtanh.f32 %v535_v26 }
 0x7ce   :  { %v1389_v27 = vpop.eup %1388 }
 0x7cf   :  { %538 = vrot.lane.b32.xlu1 %v1389_v27, %s1568_s5  ;;  %v217_v27 = vadd.f32 %v1707_v16, %v1742_v7 }
 0x841   :  { %v539_v28 = vpop.permute.xlu1 %538 }
 0x842   :  { %v541_v29 = vmul.f32 %v1387_v19, %v539_v28 }
 0x844   :  { %543 = vrot.lane.b32.xlu0 %v541_v29, %s1569_s3 }
 0x8b6   :  { %v544_v30 = vpop.permute.xlu0 %543 }
 0x8b7   :  { %547 = vst.msk [vmem:[#allocation8 + $0x10] sm:$0xff] %vm74_vm2, %v544_v30  ;;  %1260 = vmatmul.mubr.msk.f32.vlgmr.msra.gmra.mrb[4].mxu1 %vm74_vm2, %v544_v30 }
 0x8b8   :  { %1342 = vmatpush3.bf16.msra.mxu1 %v1674_v8  ;;  %1281 = vmatprep.mubr.msk.f32.mxu1 %vm1566_vm0, %v1567_v1 }
 0x8b9   :  { %1343 = vmatprep.subr.bf16.mxu1 %v1565_v0 }
 0x8bc   :  { %1345 = vmatpush3.bf16.msra.mxu1 %v1682_v13 }
 0x8bd   :  { %1352 = vmatprep.subr.bf16.mxu1 %v1565_v0 }
 0x98a   :  { %v616_v32 = vpop.f32.mrb[4].mxu1 }
 0x98b   :  { %v620_v33 = vadd.f32 %v616_v32, %v202_v31  ;;  %v1261_v34 = vpop.f32.mrb[5].mxu1 }
 0x98d   :  { %v1138_v35 = vmul.f32 -1.442695, %v620_v33 }
 0x98f   :  { %1390 = vpow2.f32 %v1138_v35 }
 0x999   :  { %v1391_v36 = vpop.eup %1390 }
 0x99a   :  { %v624_v37 = vadd.f32 1.0, %v1391_v36 }
 0x99c   :  { %1392 = vrcp.f32 %v624_v37 }
 0x9a6   :  { %v1393_v38 = vpop.eup %1392 }
 0x9a7   :  { %v627_v39 = vmul.f32 2.0, %v1393_v38  ;;  %v629_v43 = vmul.f32 %v1393_v38, %v535_v26 }
 0x9a9   :  { %v1139_v40 = vadd.f32 -1.0, %v627_v39 }
 0x9ab   :  { %631 = vrot.lane.b32.xlu1 %v1139_v40, %s1568_s5 }
 0xa1d   :  { %v632_v41 = vpop.permute.xlu1 %631 }
 0xa1e   :  { %v634_v42 = vmul.f32 %v1393_v38, %v632_v41 }
 0xa20   :  { %636 = vrot.lane.b32.xlu0 %v634_v42, %s1568_s5 }
 0xa92   :  { %v637_v44 = vpop.permute.xlu0 %636 }
 0xa93   :  { %v639_v45 = vadd.f32 %v637_v44, %v629_v43 }
 0xa95   :  { %1394 = vtanh.f32 %v639_v45 }
 0xa9f   :  { %v1395_v46 = vpop.eup %1394 }
 0xaa0   :  { %642 = vrot.lane.b32.xlu1 %v1395_v46, %s1568_s5 }
 0xb12   :  { %v643_v47 = vpop.permute.xlu1 %642 }
 0xb13   :  { %v645_v48 = vmul.f32 %v1393_v38, %v643_v47 }
 0xb15   :  { %647 = vrot.lane.b32.xlu0 %v645_v48, %s1569_s3 }
 0xb87   :  { %v648_v49 = vpop.permute.xlu0 %647 }
 0xb88   :  { %651 = vst.msk [vmem:[#allocation8 + $0x18] sm:$0xff] %vm74_vm2, %v648_v49  ;;  %1271 = vmatmul.mubr.msk.f32.vlgmr.msra.gmra.mrb[10].mxu0 %vm74_vm2, %v648_v49 }
 0xb89   :  { %1348 = vmatpush3.bf16.msra.mxu0 %v1674_v8  ;;  %1292 = vmatprep.mubr.msk.f32.mxu0 %vm1566_vm0, %v1567_v1 }
 0xb8a   :  { %1349 = vmatprep.subr.bf16.mxu0 %v1565_v0 }
 0xb8d   :  { %1351 = vmatpush3.bf16.msra.mxu0 %v1682_v13 }
 0xc5b   :  { %v720_v51 = vpop.f32.mrb[10].mxu0 }
 0xc5c   :  { %v724_v52 = vadd.f32 %v720_v51, %v207_v50  ;;  %v1272_v53 = vpop.f32.mrb[11].mxu0 }
 0xc5e   :  { %v1141_v54 = vmul.f32 -1.442695, %v724_v52 }
 0xc60   :  { %1396 = vpow2.f32 %v1141_v54 }
 0xc6a   :  { %v1397_v55 = vpop.eup %1396 }
 0xc6b   :  { %v728_v56 = vadd.f32 1.0, %v1397_v55 }
 0xc6d   :  { %1398 = vrcp.f32 %v728_v56 }
 0xc77   :  { %v1399_v57 = vpop.eup %1398 }
 0xc78   :  { %v731_v58 = vmul.f32 2.0, %v1399_v57  ;;  %v733_v62 = vmul.f32 %v1399_v57, %v639_v45  ;;  %v222_v45 = vadd.f32 %v1740_v6, %v1707_v16 }
 0xc7a   :  { %v1142_v59 = vadd.f32 -1.0, %v731_v58 }
 0xc7c   :  { %735 = vrot.lane.b32.xlu1 %v1142_v59, %s1568_s5 }
 0xcee   :  { %v736_v60 = vpop.permute.xlu1 %735 }
 0xcef   :  { %v738_v61 = vmul.f32 %v1399_v57, %v736_v60 }
 0xcf1   :  { %740 = vrot.lane.b32.xlu0 %v738_v61, %s1568_s5 }
 0xd63   :  { %v741_v63 = vpop.permute.xlu0 %740 }
 0xd64   :  { %v743_v2 = vadd.f32 %v741_v63, %v733_v62 }
 0xd66   :  { %1400 = vtanh.f32 %v743_v2 }
 0xd70   :  { %v1401_v3 = vpop.eup %1400 }
 0xd71   :  { %746 = vrot.lane.b32.xlu1 %v1401_v3, %s1568_s5 }
 0xde3   :  { %v747_v5 = vpop.permute.xlu1 %746 }
 0xde4   :  { %v749_v9 = vmul.f32 %v1399_v57, %v747_v5 }
 0xde6   :  { %751 = vrot.lane.b32.xlu0 %v749_v9, %s1569_s3 }
 0xe58   :  { %v752_v10 = vpop.permute.xlu0 %751 }
 0xe59   :  { %755 = vst.msk [vmem:[#allocation8 + $0x20] sm:$0xff] %vm74_vm2, %v752_v10  ;;  %1282 = vmatmul.mubr.msk.f32.vlgmr.msra.gmra.mrb[6].mxu1 %vm74_vm2, %v752_v10 }
 0xe5a   :  { %1354 = vmatpush3.bf16.msra.mxu1 %v1674_v8  ;;  %1303 = vmatprep.mubr.msk.f32.mxu1 %vm1566_vm0, %v1567_v1 }
 0xe5b   :  { %1355 = vmatprep.subr.bf16.mxu1 %v1565_v0 }
 0xe5e   :  { %1357 = vmatpush3.bf16.msra.mxu1 %v1682_v13 }
 0xf2c   :  { %v824_v12 = vpop.f32.mrb[6].mxu1 }
 0xf2d   :  { %v828_v14 = vadd.f32 %v824_v12, %v212_v11  ;;  %v1283_v15 = vpop.f32.mrb[7].mxu1 }
 0xf2f   :  { %v1144_v17 = vmul.f32 -1.442695, %v828_v14 }
 0xf31   :  { %1402 = vpow2.f32 %v1144_v17 }
 0xf3b   :  { %v1403_v18 = vpop.eup %1402 }
 0xf3c   :  { %v832_v19 = vadd.f32 1.0, %v1403_v18 }
 0xf3e   :  { %1404 = vrcp.f32 %v832_v19 }
 0xf48   :  { %v1405_v20 = vpop.eup %1404 }
 0xf49   :  { %v835_v8 = vmul.f32 2.0, %v1405_v20  ;;  %v837_v13 = vmul.f32 %v1405_v20, %v743_v2 }
 0xf4b   :  { %v1145_v21 = vadd.f32 -1.0, %v835_v8 }
 0xf4d   :  { %839 = vrot.lane.b32.xlu1 %v1145_v21, %s1568_s5 }
 0xfbf   :  { %v840_v1 = vpop.permute.xlu1 %839 }
 0xfc0   :  { %v842_v0 = vmul.f32 %v1405_v20, %v840_v1 }
 0xfc2   :  { %844 = vrot.lane.b32.xlu0 %v842_v0, %s1568_s5 }
0x1034   :  { %v845_v22 = vpop.permute.xlu0 %844 }
0x1035   :  { %v847_v4 = vadd.f32 %v845_v22, %v837_v13 }
0x1037   :  { %1406 = vtanh.f32 %v847_v4 }
0x1041   :  { %v1407_v23 = vpop.eup %1406 }
0x1042   :  { %850 = vrot.lane.b32.xlu1 %v1407_v23, %s1568_s5 }
0x10b4   :  { %v851_v24 = vpop.permute.xlu1 %850 }
0x10b5   :  { %v853_v25 = vmul.f32 %v1405_v20, %v851_v24 }
0x10b7   :  { %855 = vrot.lane.b32.xlu0 %v853_v25, %s1569_s3 }
0x1129   :  { %v856_v26 = vpop.permute.xlu0 %855 }
0x112a   :  { %859 = vst.msk [vmem:[#allocation8 + $0x28] sm:$0xff] %vm74_vm2, %v856_v26  ;;  %1293 = vmatmul.mubr.msk.f32.vlgmr.msra.gmra.mrb[12].mxu0 %vm74_vm2, %v856_v26 }
0x11fd   :  { %v928_v28 = vpop.f32.mrb[12].mxu0 }
0x11fe   :  { %v932_v29 = vadd.f32 %v928_v28, %v217_v27  ;;  %v1294_v30 = vpop.f32.mrb[13].mxu0 }
0x1200   :  { %v1147_v31 = vmul.f32 -1.442695, %v932_v29 }
0x1202   :  { %1408 = vpow2.f32 %v1147_v31 }
0x120c   :  { %v1409_v32 = vpop.eup %1408 }
0x120d   :  { %v936_v33 = vadd.f32 1.0, %v1409_v32 }
0x120f   :  { %1410 = vrcp.f32 %v936_v33 }
0x1219   :  { %v1411_v34 = vpop.eup %1410 }
0x121a   :  { %v939_v35 = vmul.f32 2.0, %v1411_v34  ;;  %v941_v39 = vmul.f32 %v1411_v34, %v847_v4 }
0x121c   :  { %v1148_v36 = vadd.f32 -1.0, %v939_v35 }
0x121e   :  { %943 = vrot.lane.b32.xlu1 %v1148_v36, %s1568_s5 }
0x1290   :  { %v944_v37 = vpop.permute.xlu1 %943 }
0x1291   :  { %v946_v38 = vmul.f32 %v1411_v34, %v944_v37 }
0x1293   :  { %948 = vrot.lane.b32.xlu0 %v946_v38, %s1568_s5 }
0x1305   :  { %v949_v40 = vpop.permute.xlu0 %948 }
0x1306   :  { %v951_v7 = vadd.f32 %v949_v40, %v941_v39 }
0x1308   :  { %1412 = vtanh.f32 %v951_v7 }
0x1312   :  { %v1413_v41 = vpop.eup %1412 }
0x1313   :  { %954 = vrot.lane.b32.xlu1 %v1413_v41, %s1568_s5 }
0x1385   :  { %v955_v42 = vpop.permute.xlu1 %954 }
0x1386   :  { %v957_v43 = vmul.f32 %v1411_v34, %v955_v42 }
0x1388   :  { %959 = vrot.lane.b32.xlu0 %v957_v43, %s1569_s3 }
0x13fa   :  { %v960_v44 = vpop.permute.xlu0 %959 }
0x13fb   :  { %963 = vst.msk [vmem:[#allocation8 + $0x30] sm:$0xff] %vm74_vm2, %v960_v44  ;;  %1304 = vmatmul.mubr.msk.f32.vlgmr.msra.gmra.mrb[8].mxu1 %vm74_vm2, %v960_v44 }
0x14ce   :  { %v1032_v46 = vpop.f32.mrb[8].mxu1 }
0x14cf   :  { %v1036_v47 = vadd.f32 %v1032_v46, %v222_v45  ;;  %v1305_v48 = vpop.f32.mrb[9].mxu1 }
0x14d1   :  { %v1150_v49 = vmul.f32 -1.442695, %v1036_v47 }
0x14d3   :  { %1414 = vpow2.f32 %v1150_v49 }
0x14dd   :  { %v1415_v50 = vpop.eup %1414 }
0x14de   :  { %v1040_v51 = vadd.f32 1.0, %v1415_v50 }
0x14e0   :  { %1416 = vrcp.f32 %v1040_v51 }
0x14ea   :  { %v1417_v52 = vpop.eup %1416 }
0x14eb   :  { %v1043_v53 = vmul.f32 2.0, %v1417_v52  ;;  %v1045_v57 = vmul.f32 %v1417_v52, %v951_v7 }
0x14ed   :  { %v1151_v54 = vadd.f32 -1.0, %v1043_v53 }
0x14ef   :  { %1047 = vrot.lane.b32.xlu1 %v1151_v54, %s1568_s5 }
0x1561   :  { %v1048_v55 = vpop.permute.xlu1 %1047 }
0x1562   :  { %v1050_v56 = vmul.f32 %v1417_v52, %v1048_v55 }
0x1564   :  { %1052 = vrot.lane.b32.xlu0 %v1050_v56, %s1568_s5 }
0x15d6   :  { %v1053_v58 = vpop.permute.xlu0 %1052 }
0x15d7   :  { %v1055_v16 = vadd.f32 %v1053_v58, %v1045_v57 }
0x15d9   :  { %1418 = vtanh.f32 %v1055_v16 }
0x15e3   :  { %v1419_v6 = vpop.eup %1418 }
0x15e4   :  { %1058 = vrot.lane.b32.xlu1 %v1419_v6, %s1568_s5 }
0x15e8   :  { %1070 = vrot.lane.b32.xlu1 %v1055_v16, %s1570_s25 }
0x1656   :  { %v1059_v59 = vpop.permute.xlu1 %1058 }
0x1657   :  { %v1061_v60 = vmul.f32 %v1417_v52, %v1059_v59 }
0x1659   :  { %1063 = vrot.lane.b32.xlu0 %v1061_v60, %s1569_s3 }
0x165a   :  { %v1071_v61 = vpop.permute.xlu1 %1070 }
0x165b   :  { %1073 = vst.msk [vmem:[#allocation11] sm:$0xff] %vm74_vm2, %v1071_v61 }
0x16cb   :  { %v1064_v62 = vpop.permute.xlu0 %1063 }
0x16cc   :  { %1067 = vst.msk [vmem:[#allocation8 + $0x38] sm:$0xff] %vm74_vm2, %v1064_v62  ;;  %1068 = vst.msk [vmem:[#allocation9] sm:$0xff] %vm74_vm2, %v1064_v62 }
0x16cd   :  { %1497 = shalt.err (!%p1494_p0)
}
0x16ce   :  { %s1498_s13 = scalar_lea.hbm %s1875_s7, 128 }
0x16cf   :  { %p1499_p1 = scmp.ne.s32.totalorder %s1875_s7, %s1498_s13  ;;  %p1502_p2 = scmp.lt.u32.totalorder %s1498_s13, %s1875_s7 }
0x16d1   :  { %p1504_p3 = pnand %p1502_p2, %p1499_p1 }
0x16d3   :  { %1507 = shalt.err (!%p1504_p3)
}
0x16d4   :  { %1095 = dma.vmem_to_hbm [thread:$0]  %s1093_s27, 128, %s1875_s7, [#allocation10]  }
0x16d5   :  { %s1508_s30 = scalar_lea.vmem %s1813_s1, 1024  ;;  %p1513_p5 = scmp.lt.s32.totalorder %s1813_s1, %s1813_s1 }
0x16d6   :  { %p1509_p4 = scmp.ne.s32.totalorder %s1813_s1, %s1508_s30  ;;  %p1514_p6 = scmp.lt.s32.totalorder %s1508_s30, %s1508_s30 }
0x16d8   :  { %p1515_p7 = por %p1514_p6, %p1513_p5 }
0x16da   :  { %p1516_p8 = pnand %p1515_p7, %p1509_p4 }
0x16dc   :  { %1519 = shalt.err (!%p1516_p8)
}
0x16dd   :  { %s1520_s4 = scalar_lea.hbm %s1874_s6, 1024 }
0x16de   :  { %p1521_p9 = scmp.ne.s32.totalorder %s1874_s6, %s1520_s4  ;;  %p1524_p10 = scmp.lt.u32.totalorder %s1520_s4, %s1874_s6 }
0x16e0   :  { %p1526_p11 = pnand %p1524_p10, %p1521_p9 }
0x16e2   :  { %1529 = shalt.err (!%p1526_p11)
}
0x16e3   :  { %1085 = dma.vmem_to_hbm [thread:$0]  %s1813_s1, 1024, %s1874_s6, [#allocation4], %s1562_s17, %s1562_s17, %s1563_s18  }
0x16e4   :  { %s1530_s25 = scalar_lea.vmem %s1817_s9, 128  ;;  %p1535_p13 = scmp.lt.s32.totalorder %s1817_s9, %s1817_s9 }
0x16e5   :  { %p1531_p12 = scmp.ne.s32.totalorder %s1817_s9, %s1530_s25  ;;  %p1536_p0 = scmp.lt.s32.totalorder %s1530_s25, %s1530_s25 }
0x16e7   :  { %p1537_p1 = por %p1536_p0, %p1535_p13 }
0x16e9   :  { %p1538_p2 = pnand %p1537_p1, %p1531_p12 }
0x16eb   :  { %1541 = shalt.err (!%p1538_p2)
}
0x16ec   :  { %s1542_s29 = scalar_lea.hbm %s1876_s8, 128 }
0x16ed   :  { %p1543_p3 = scmp.ne.s32.totalorder %s1876_s8, %s1542_s29  ;;  %p1546_p4 = scmp.lt.u32.totalorder %s1542_s29, %s1876_s8 }
0x16ef   :  { %p1548_p5 = pnand %p1546_p4, %p1543_p3 }
0x16f1   :  { %1551 = shalt.err (!%p1548_p5)
}
0x16f2   :  { %1105 = dma.vmem_to_hbm [thread:$0]  %s1817_s9, 128, %s1876_s8, [#allocation10]  }
0x16f3   :  { %1556 = dma.done.wait [#allocation4], 1024  }
0x16f4   :  { %1557 = vsyncadd [#allocation4], 4294966272 }
0x16f5   :  { %1558 = dma.done.wait [#allocation10], 256  }
0x16f6   :  { %1559 = vsyncadd [#allocation10], 4294967040 }
0x16f7   :  { %1115 = vsyncpa [#allocation3], 1 }
0x16f8   :  { %1116 = vsyncpa [#allocation6], 1 }
0x16f9   :  { %1117 = vsyncpa [#allocation4], 1 }
0x16fa   :  { %1118 = vsyncpa [#allocation10], 1 }

</bundles_post_ra>
